<compile_context>
chip_gen: v6e
topology: v6e:2x2x1
jax: 0.10.0
libtpu: 0.0.40
codegen_flags: <defaults>
</compile_context>

<pallas_src>
import math

import jax
import jax.numpy as jnp
from jax.experimental import pallas as pl
from jax.experimental.pallas import tpu as pltpu


def _downsample_conv_kernel(xph_ref, w_ref, b_ref, out_ref):
    # xph_ref: (4*N, Ho+1, Wo+1, Cin)  bf16 -- parity phases (p, q) of the
    #          zero-padded NHWC input, stacked phase-major on the leading dim,
    #          phase index = 2*p + q where phase holds xp[:, p::2, q::2, :].
    # w_ref:   (9, Cin, Cout)          bf16 -- tap-major weights, tap = kh*3 + kw,
    #          each tap is W_torch[:, :, kh, kw].T (i.e. (Cin, Cout)).
    # b_ref:   (1, Cout)               f32
    # out_ref: (N*Ho*Wo, Cout)         f32  -- rows ordered (n, ho, wo) row-major
    four_n, hp, wp, cin = xph_ref.shape
    n = four_n // 4
    ho, wo = hp - 1, wp - 1
    cout = w_ref.shape[2]

    xph = xph_ref[...]                       # one whole-array VMEM load (bf16)
    w = w_ref[...]                           # (9, Cin, Cout) bf16

    acc = jnp.zeros((n * ho * wo, cout), jnp.float32)
    # Static Python loops -> fully unrolled: 9 MXU pushes, all accumulation in f32.
    for kh in range(3):
        for kw in range(3):
            phase = 2 * (kh % 2) + (kw % 2)
            dh, dw = kh // 2, kw // 2
            # Contiguous shifted window of the right phase == the stride-2 gather
            # x_padded[:, 2*ho+kh, 2*wo+kw, :] for this tap.
            xt = xph[phase * n:(phase + 1) * n, dh:dh + ho, dw:dw + wo, :]
            xt = xt.reshape(n * ho * wo, cin)            # collapse leading dims
            acc = acc + jnp.dot(xt, w[kh * 3 + kw],
                                preferred_element_type=jnp.float32)

    out_ref[...] = (acc + b_ref[...]).astype(out_ref.dtype)


def downsample(x, t, sentence_embedding, weight, bias):
    """Pallas implementation of Downsample.forward.

    x:      (N, Cin, H, W) float32  -- NCHW, as in the PyTorch module
    t, sentence_embedding: ignored (the PyTorch forward discards them)
    weight: (Cout, Cin, 3, 3)       -- torch Conv2d layout
    bias:   (Cout,)
    returns (N, Cout, Ho, Wo) float32 with Ho=(H-1)//2+1, Wo=(W-1)//2+1
    """
    del t, sentence_embedding                      # unused, like the PyTorch forward
    n, cin, h, w = x.shape
    cout = weight.shape[0]
    ho = (h - 1) // 2 + 1
    wo = (w - 1) // 2 + 1

    # ---- layout plumbing only (no compute): NHWC, pad=1, parity-phase split ----
    x_nhwc = jnp.transpose(x, (0, 2, 3, 1)).astype(jnp.float32)
    xp = jnp.pad(x_nhwc, ((0, 0), (1, 1), (1, 1), (0, 0)))      # zero padding = 1
    phases = []
    for p in (0, 1):
        for q in (0, 1):
            ph = xp[:, p::2, q::2, :]
            # Pad every phase to a uniform (N, Ho+1, Wo+1, Cin); padded entries are
            # never read by any tap window.
            ph = jnp.pad(ph, ((0, 0),
                              (0, ho + 1 - ph.shape[1]),
                              (0, wo + 1 - ph.shape[2]),
                              (0, 0)))
            phases.append(ph)
    xph = jnp.stack(phases, axis=0).reshape(4 * n, ho + 1, wo + 1, cin)
    xph = xph.astype(jnp.bfloat16)                 # bf16 MXU inputs, f32 accumulation

    # (Cout, Cin, 3, 3) -> (kh, kw, Cin, Cout) -> (9, Cin, Cout), tap = kh*3 + kw
    w_taps = jnp.transpose(weight, (2, 3, 1, 0)).reshape(9, cin, cout)
    w_taps = w_taps.astype(jnp.bfloat16)
    b2 = bias.reshape(1, cout).astype(jnp.float32)

    m = n * ho * wo
    flops = 2 * 9 * m * cin * cout + m * cout
    bytes_accessed = int(xph.size) * 2 + int(w_taps.size) * 2 + int(b2.size) * 4 \
        + m * cout * 4

    vmem = pl.BlockSpec(memory_space=pltpu.MemorySpace.VMEM)
    out2d = pl.pallas_call(
        _downsample_conv_kernel,
        out_shape=jax.ShapeDtypeStruct((m, cout), jnp.float32),
        in_specs=[vmem, vmem, vmem],
        out_specs=vmem,
        cost_estimate=pl.CostEstimate(flops=flops, transcendentals=0,
                                      bytes_accessed=bytes_accessed),
    )(xph, w_taps, b2)

    # (N*Ho*Wo, Cout) -> (N, Cout, Ho, Wo) to match the PyTorch NCHW output.
    return jnp.transpose(out2d.reshape(n, ho, wo, cout), (0, 3, 1, 2))


def _reference(x, weight, bias):
    """Pure-JAX port of the PyTorch forward (f32) for verification."""
    out = jax.lax.conv_general_dilated(
        x, weight, window_strides=(2, 2), padding=((1, 1), (1, 1)),
        dimension_numbers=("NCHW", "OIHW", "NCHW"))
    return out + bias[None, :, None, None]


if __name__ == "__main__":
    N, C, H, W = 2, 4, 16, 16

    key = jax.random.PRNGKey(0)
    k_x, k_t, k_s, k_w, k_b = jax.random.split(key, 5)

    x = jax.random.normal(k_x, (N, C, H, W), jnp.float32)
    t = jax.random.uniform(k_t, (N,), jnp.float32, 0.0, 1000.0)     # ignored by forward
    sent = jax.random.normal(k_s, (N, 8), jnp.float32)              # ignored by forward

    # PyTorch Conv2d default init: U(-1/sqrt(fan_in), 1/sqrt(fan_in)), fan_in = Cin*3*3.
    bound = 1.0 / math.sqrt(C * 3 * 3)
    weight = jax.random.uniform(k_w, (C, C, 3, 3), jnp.float32, -bound, bound)
    bias = jax.random.uniform(k_b, (C,), jnp.float32, -bound, bound)

    out = downsample(x, t, sent, weight, bias)
    out = jax.block_until_ready(out)

    ref = _reference(x, weight, bias)
    assert out.shape == (N, C, H // 2, W // 2), out.shape
    max_err = jnp.max(jnp.abs(out - ref))
    # bf16 matmul inputs with f32 accumulation -> relaxed tolerance vs. the f32 reference.
    assert jnp.allclose(out, ref, atol=3e-2, rtol=3e-2), f"max abs err = {max_err}"

    print("KERNEL_OK")
</pallas_src>

<mosaic_0001>
module attributes {stable_mosaic.version = 11 : i64} {
  func.func @_downsample_conv_kernel(%arg0: memref<8x9x9x4xbf16, #tpu.memory_space<vmem>>, %arg1: memref<9x4x4xbf16, #tpu.memory_space<vmem>>, %arg2: memref<1x4xf32, #tpu.memory_space<vmem>>, %arg3: memref<128x4xf32, #tpu.memory_space<vmem>>) attributes {dimension_semantics = [], scalar_prefetch = 0 : i64, scratch_operands = 0 : i64, tpu.core_type = #tpu.core_type<tc>} {
    %c0 = arith.constant 0 : index
    %c0_0 = arith.constant 0 : index
    %c0_1 = arith.constant 0 : index
    %c0_2 = arith.constant 0 : index
    %0 = vector.load %arg0[%c0, %c0_0, %c0_1, %c0_2] : memref<8x9x9x4xbf16, #tpu.memory_space<vmem>>, vector<8x9x9x4xbf16>
    %c0_3 = arith.constant 0 : index
    %c0_4 = arith.constant 0 : index
    %c0_5 = arith.constant 0 : index
    %1 = vector.load %arg1[%c0_3, %c0_4, %c0_5] : memref<9x4x4xbf16, #tpu.memory_space<vmem>>, vector<9x4x4xbf16>
    %cst = arith.constant 0.000000e+00 : f32
    %2 = vector.broadcast %cst : f32 to vector<128x4xf32>
    %3 = vector.extract_strided_slice %0 {offsets = [0, 0, 0, 0], sizes = [2, 8, 8, 4], strides = [1, 1, 1, 1]} : vector<8x9x9x4xbf16> to vector<2x8x8x4xbf16>
    %4 = vector.shape_cast %3 : vector<2x8x8x4xbf16> to vector<128x4xbf16>
    %5 = vector.extract_strided_slice %1 {offsets = [0, 0, 0], sizes = [1, 4, 4], strides = [1, 1, 1]} : vector<9x4x4xbf16> to vector<1x4x4xbf16>
    %6 = vector.shape_cast %5 : vector<1x4x4xbf16> to vector<4x4xbf16>
    %cst_6 = arith.constant dense<0.000000e+00> : vector<128x4xf32>
    %7 = tpu.matmul %4, %6, %cst_6 {dimension_numbers = #tpu.dot_dimension_numbers<[1], [0], [0], [1], [0, 0, 1, 1], [], []>} : vector<128x4xbf16>, vector<4x4xbf16>, vector<128x4xf32> -> vector<128x4xf32>
    %8 = arith.addf %2, %7 : vector<128x4xf32>
    %9 = vector.extract_strided_slice %0 {offsets = [2, 0, 0, 0], sizes = [2, 8, 8, 4], strides = [1, 1, 1, 1]} : vector<8x9x9x4xbf16> to vector<2x8x8x4xbf16>
    %10 = vector.shape_cast %9 : vector<2x8x8x4xbf16> to vector<128x4xbf16>
    %11 = vector.extract_strided_slice %1 {offsets = [1, 0, 0], sizes = [1, 4, 4], strides = [1, 1, 1]} : vector<9x4x4xbf16> to vector<1x4x4xbf16>
    %12 = vector.shape_cast %11 : vector<1x4x4xbf16> to vector<4x4xbf16>
    %cst_7 = arith.constant dense<0.000000e+00> : vector<128x4xf32>
    %13 = tpu.matmul %10, %12, %cst_7 {dimension_numbers = #tpu.dot_dimension_numbers<[1], [0], [0], [1], [0, 0, 1, 1], [], []>} : vector<128x4xbf16>, vector<4x4xbf16>, vector<128x4xf32> -> vector<128x4xf32>
    %14 = arith.addf %8, %13 : vector<128x4xf32>
    %15 = vector.extract_strided_slice %0 {offsets = [0, 0, 1, 0], sizes = [2, 8, 8, 4], strides = [1, 1, 1, 1]} : vector<8x9x9x4xbf16> to vector<2x8x8x4xbf16>
    %16 = vector.shape_cast %15 : vector<2x8x8x4xbf16> to vector<128x4xbf16>
    %17 = vector.extract_strided_slice %1 {offsets = [2, 0, 0], sizes = [1, 4, 4], strides = [1, 1, 1]} : vector<9x4x4xbf16> to vector<1x4x4xbf16>
    %18 = vector.shape_cast %17 : vector<1x4x4xbf16> to vector<4x4xbf16>
    %cst_8 = arith.constant dense<0.000000e+00> : vector<128x4xf32>
    %19 = tpu.matmul %16, %18, %cst_8 {dimension_numbers = #tpu.dot_dimension_numbers<[1], [0], [0], [1], [0, 0, 1, 1], [], []>} : vector<128x4xbf16>, vector<4x4xbf16>, vector<128x4xf32> -> vector<128x4xf32>
    %20 = arith.addf %14, %19 : vector<128x4xf32>
    %21 = vector.extract_strided_slice %0 {offsets = [4, 0, 0, 0], sizes = [2, 8, 8, 4], strides = [1, 1, 1, 1]} : vector<8x9x9x4xbf16> to vector<2x8x8x4xbf16>
    %22 = vector.shape_cast %21 : vector<2x8x8x4xbf16> to vector<128x4xbf16>
    %23 = vector.extract_strided_slice %1 {offsets = [3, 0, 0], sizes = [1, 4, 4], strides = [1, 1, 1]} : vector<9x4x4xbf16> to vector<1x4x4xbf16>
    %24 = vector.shape_cast %23 : vector<1x4x4xbf16> to vector<4x4xbf16>
    %cst_9 = arith.constant dense<0.000000e+00> : vector<128x4xf32>
    %25 = tpu.matmul %22, %24, %cst_9 {dimension_numbers = #tpu.dot_dimension_numbers<[1], [0], [0], [1], [0, 0, 1, 1], [], []>} : vector<128x4xbf16>, vector<4x4xbf16>, vector<128x4xf32> -> vector<128x4xf32>
    %26 = arith.addf %20, %25 : vector<128x4xf32>
    %27 = vector.extract_strided_slice %0 {offsets = [6, 0, 0, 0], sizes = [2, 8, 8, 4], strides = [1, 1, 1, 1]} : vector<8x9x9x4xbf16> to vector<2x8x8x4xbf16>
    %28 = vector.shape_cast %27 : vector<2x8x8x4xbf16> to vector<128x4xbf16>
    %29 = vector.extract_strided_slice %1 {offsets = [4, 0, 0], sizes = [1, 4, 4], strides = [1, 1, 1]} : vector<9x4x4xbf16> to vector<1x4x4xbf16>
    %30 = vector.shape_cast %29 : vector<1x4x4xbf16> to vector<4x4xbf16>
    %cst_10 = arith.constant dense<0.000000e+00> : vector<128x4xf32>
    %31 = tpu.matmul %28, %30, %cst_10 {dimension_numbers = #tpu.dot_dimension_numbers<[1], [0], [0], [1], [0, 0, 1, 1], [], []>} : vector<128x4xbf16>, vector<4x4xbf16>, vector<128x4xf32> -> vector<128x4xf32>
    %32 = arith.addf %26, %31 : vector<128x4xf32>
    %33 = vector.extract_strided_slice %0 {offsets = [4, 0, 1, 0], sizes = [2, 8, 8, 4], strides = [1, 1, 1, 1]} : vector<8x9x9x4xbf16> to vector<2x8x8x4xbf16>
    %34 = vector.shape_cast %33 : vector<2x8x8x4xbf16> to vector<128x4xbf16>
    %35 = vector.extract_strided_slice %1 {offsets = [5, 0, 0], sizes = [1, 4, 4], strides = [1, 1, 1]} : vector<9x4x4xbf16> to vector<1x4x4xbf16>
    %36 = vector.shape_cast %35 : vector<1x4x4xbf16> to vector<4x4xbf16>
    %cst_11 = arith.constant dense<0.000000e+00> : vector<128x4xf32>
    %37 = tpu.matmul %34, %36, %cst_11 {dimension_numbers = #tpu.dot_dimension_numbers<[1], [0], [0], [1], [0, 0, 1, 1], [], []>} : vector<128x4xbf16>, vector<4x4xbf16>, vector<128x4xf32> -> vector<128x4xf32>
    %38 = arith.addf %32, %37 : vector<128x4xf32>
    %39 = vector.extract_strided_slice %0 {offsets = [0, 1, 0, 0], sizes = [2, 8, 8, 4], strides = [1, 1, 1, 1]} : vector<8x9x9x4xbf16> to vector<2x8x8x4xbf16>
    %40 = vector.shape_cast %39 : vector<2x8x8x4xbf16> to vector<128x4xbf16>
    %41 = vector.extract_strided_slice %1 {offsets = [6, 0, 0], sizes = [1, 4, 4], strides = [1, 1, 1]} : vector<9x4x4xbf16> to vector<1x4x4xbf16>
    %42 = vector.shape_cast %41 : vector<1x4x4xbf16> to vector<4x4xbf16>
    %cst_12 = arith.constant dense<0.000000e+00> : vector<128x4xf32>
    %43 = tpu.matmul %40, %42, %cst_12 {dimension_numbers = #tpu.dot_dimension_numbers<[1], [0], [0], [1], [0, 0, 1, 1], [], []>} : vector<128x4xbf16>, vector<4x4xbf16>, vector<128x4xf32> -> vector<128x4xf32>
    %44 = arith.addf %38, %43 : vector<128x4xf32>
    %45 = vector.extract_strided_slice %0 {offsets = [2, 1, 0, 0], sizes = [2, 8, 8, 4], strides = [1, 1, 1, 1]} : vector<8x9x9x4xbf16> to vector<2x8x8x4xbf16>
    %46 = vector.shape_cast %45 : vector<2x8x8x4xbf16> to vector<128x4xbf16>
    %47 = vector.extract_strided_slice %1 {offsets = [7, 0, 0], sizes = [1, 4, 4], strides = [1, 1, 1]} : vector<9x4x4xbf16> to vector<1x4x4xbf16>
    %48 = vector.shape_cast %47 : vector<1x4x4xbf16> to vector<4x4xbf16>
    %cst_13 = arith.constant dense<0.000000e+00> : vector<128x4xf32>
    %49 = tpu.matmul %46, %48, %cst_13 {dimension_numbers = #tpu.dot_dimension_numbers<[1], [0], [0], [1], [0, 0, 1, 1], [], []>} : vector<128x4xbf16>, vector<4x4xbf16>, vector<128x4xf32> -> vector<128x4xf32>
    %50 = arith.addf %44, %49 : vector<128x4xf32>
    %51 = vector.extract_strided_slice %0 {offsets = [0, 1, 1, 0], sizes = [2, 8, 8, 4], strides = [1, 1, 1, 1]} : vector<8x9x9x4xbf16> to vector<2x8x8x4xbf16>
    %52 = vector.shape_cast %51 : vector<2x8x8x4xbf16> to vector<128x4xbf16>
    %53 = vector.extract_strided_slice %1 {offsets = [8, 0, 0], sizes = [1, 4, 4], strides = [1, 1, 1]} : vector<9x4x4xbf16> to vector<1x4x4xbf16>
    %54 = vector.shape_cast %53 : vector<1x4x4xbf16> to vector<4x4xbf16>
    %cst_14 = arith.constant dense<0.000000e+00> : vector<128x4xf32>
    %55 = tpu.matmul %52, %54, %cst_14 {dimension_numbers = #tpu.dot_dimension_numbers<[1], [0], [0], [1], [0, 0, 1, 1], [], []>} : vector<128x4xbf16>, vector<4x4xbf16>, vector<128x4xf32> -> vector<128x4xf32>
    %56 = arith.addf %50, %55 : vector<128x4xf32>
    %c0_15 = arith.constant 0 : index
    %c0_16 = arith.constant 0 : index
    %57 = vector.load %arg2[%c0_15, %c0_16] : memref<1x4xf32, #tpu.memory_space<vmem>>, vector<1x4xf32>
    %58 = vector.broadcast %57 : vector<1x4xf32> to vector<128x4xf32>
    %59 = arith.addf %56, %58 : vector<128x4xf32>
    %c0_17 = arith.constant 0 : index
    %c0_18 = arith.constant 0 : index
    %60 = vector.load %arg3[%c0_17, %c0_18] : memref<128x4xf32, #tpu.memory_space<vmem>>, vector<128x4xf32>
    tpu.vector_store %arg3[%c0_17, %c0_18], %59 {strides = array<i32>} : memref<128x4xf32, #tpu.memory_space<vmem>>, vector<128x4xf32>,
    return
  }
}

</mosaic_0001>

<bundles_post_ra>
// kernel: tpu_custom_call.1
= control target key start
LH: loop header
LB: loop body
LE: loop exit
PB: predicated region body
PF: predicated region fallthrough
CT: control target
= control target key end

     0   :  { %vm191_vm0 = vcmask 1041408   ;;  %vm166_vm1 = vcmask 31744   ;;  %vm456_vm2 = vsmask.f32 3328  ;;  %vm457_vm3 = vsmask.f32 7440  ;;  %s3692_s1 = inlined_call_operand.vmem [shape: bf16[9,4,4], index: 1, kind: input, shape index: {}]   ;;  %s3693_s0 = inlined_call_operand.vmem [shape: bf16[8,9,9,4], index: 0, kind: input, shape index: {}]   ;;  %s3694_s2 = inlined_call_operand.vmem [shape: f32[1,4], index: 2, kind: input, shape index: {}]   ;;  %s3695_s3 = inlined_call_operand.vmem [shape: f32[128,4], index: 3, kind: output, shape index: {}]  }
   0x1   :  { %v118_v0 = vld [vmem:[%s3692_s1 + $0x2] sm:$0x3]  ;;  %v51_v1 = vld [vmem:[%s3693_s0 + $0x90] sm:$0xf]  ;;  %v2603_v2 = vld [vmem:[%s3693_s0 + $0x98] sm:$0xf] }
   0x2   :  { %3714 = vst [vmem:[#allocation2_spill] sm:$0xff] %v2603_v2  ;;  %2510 = vmatprep.subr.msk.bf16.mxu0 %vm191_vm0, %v118_v0  ;;  %2511 = vmatprep.subr.msk.bf16.mxu1 %vm191_vm0, %v118_v0  ;;  %v193_v3 = vsel %vm191_vm0, %v118_v0, 0  ;;  %v2611_v4 = vld [vmem:[%s3693_s0 + $0xa0] sm:$0xf]  ;;  %v2616_v5 = vld [vmem:[%s3693_s0 + $0xa8] sm:$0xf]  ;;  %v2120_v6 = vcombine.low %v51_v1, %v2603_v2  ;;  %vm2741_vm4 = vmor %vm456_vm2, %vm457_vm3 }
   0x3   :  { %3715 = vst [vmem:[#allocation3_spill] sm:$0xff] %v2611_v4  ;;  %3716 = vst [vmem:[#allocation4_spill] sm:$0xff] %v2616_v5  ;;  %2347 = vmatpush3.bf16.msra.mxu0 %v193_v3  ;;  %2509 = vmatpush3.bf16.msra.mxu1 %v193_v3  ;;  %v2622_v7 = vld [vmem:[%s3693_s0 + $0xb0] sm:$0xf]  ;;  %v2121_v8 = vcombine.low %v2611_v4, %v2616_v5  ;;  %v60_v10 = vld [vmem:[%s3693_s0 + $0xd8] sm:$0xf] }
   0x4   :  { %3717 = vst [vmem:[#allocation5_spill] sm:$0xff] %v2622_v7  ;;  %v2634_v11 = vld [vmem:[%s3693_s0 + $0xe0] sm:$0xf]  ;;  %2348 = vmatprep.mubr.msk.bf16.mxu0 %vm166_vm1, %v2120_v6  ;;  %v2642_v13 = vld [vmem:[%s3693_s0 + $0xe8] sm:$0xf] }
   0x5   :  { %3718 = vst [vmem:[#allocation6_spill] sm:$0xff] %v2634_v11  ;;  %3719 = vst [vmem:[#allocation7_spill] sm:$0xff] %v2642_v13  ;;  %v63_v14 = vld [vmem:[%s3693_s0 + $0xf0] sm:$0xf]  ;;  %v2124_v15 = vcombine.low %v60_v10, %v2634_v11  ;;  %v117_v16 = vld [vmem:[%s3692_s1] sm:$0x3] }
   0x6   :  { %v2125_v17 = vcombine.low %v2642_v13, %v63_v14  ;;  %2512 = vmatprep.subr.msk.bf16.mxu1 %vm191_vm0, %v117_v16  ;;  %v357_v19 = vsel %vm191_vm0, %v117_v16, 0  ;;  %v119_v20 = vld [vmem:[%s3692_s1 + $0x4] sm:$0x3]  ;;  %v2662_v21 = vld [vmem:[%s3693_s0 + $0xb8] sm:$0xf]  ;;  %2349 = vmatmul.mubr.msk.bf16.vlgmr.msra.gmra.mxu0 %vm166_vm1, %v2121_v8 }
   0x7   :  { %3720 = vst [vmem:[#allocation8_spill] sm:$0xff] %v2662_v21  ;;  %2356 = vmatprep.mubr.msk.bf16.mxu1 %vm166_vm1, %v2124_v15  ;;  %v732_v22 = vsel %vm191_vm0, %v119_v20, 0  ;;  %v2122_v23 = vcombine.low %v2622_v7, %v2662_v21  ;;  %v64_v24 = vld [vmem:[%s3693_s0 + $0xf8] sm:$0xf]  ;;  %v65_v25 = vld [vmem:[%s3693_s0 + $0x100] sm:$0xf]  ;;  %2513 = vmatprep.subr.msk.bf16.mxu0 %vm191_vm0, %v119_v20 }
   0x8   :  { %2357 = vmatmul.mubr.msk.bf16.vlgmr.msra.gmra.mxu1 %vm166_vm1, %v2125_v17  ;;  %v2126_v26 = vcombine.low %v64_v24, %v65_v25  ;;  %v2680_v27 = vld [vmem:[%s3693_s0 + $0xc0] sm:$0xf]  ;;  %v58_v28 = vld [vmem:[%s3693_s0 + $0xc8] sm:$0xf]  ;;  %2383 = vmatpush3.bf16.msra.mxu0 %v732_v22  ;;  %v67_v31 = vld [vmem:[%s3693_s0 + $0x110] sm:$0xf] }
   0x9   :  { %3721 = vst [vmem:[#allocation9_spill] sm:$0xff] %v2680_v27  ;;  %v66_v29 = vld [vmem:[%s3693_s0 + $0x108] sm:$0xf]  ;;  %2365 = vmatpush3.bf16.msra.mxu1 %v357_v19  ;;  %v2123_v30 = vcombine.low %v2680_v27, %v58_v28  ;;  %v15_v32 = vld [vmem:[%s3693_s0] sm:$0xf]  ;;  %2352 = vmatprep.mubr.msk.bf16.mxu0 %vm166_vm1, %v2122_v23 }
   0xa   :  { %v2698_v33 = vld [vmem:[%s3693_s0 + $0x8] sm:$0xf]  ;;  %2360 = vmatprep.mubr.msk.bf16.mxu1 %vm166_vm1, %v2126_v26  ;;  %v2127_v35 = vcombine.low %v66_v29, %v67_v31  ;;  %v460_v37 = vshrl.u32 %v15_v32, 16  ;;  %v463_v38 = vshll.u32 %v15_v32, 16  ;;  %v16_v39 = vld [vmem:[%s3693_s0 + $0x4] sm:$0x1] }
   0xb   :  { %v2136_v36 = vcombine.low %v15_v32, %v2698_v33  ;;  %v18_v40 = vld [vmem:[%s3693_s0 + $0xc] sm:$0x1]  ;;  %v474_v41 = vshrl.u32 %v2698_v33, 16  ;;  %v477_v42 = vshll.u32 %v2698_v33, 16  ;;  %v469_v43 = vshll.u32 %v16_v39, 16 }
   0xc   :  { %v483_v44 = vshll.u32 %v18_v40, 16  ;;  %v2716_v45 = vld [vmem:[%s3693_s0 + $0x10] sm:$0xf]  ;;  %v462_v46 = vrot.slane %v460_v37, 4  ;;  %v465_v47 = vrot.slane %v463_v38, 5 }
   0xd   :  { %v2721_v48 = vld [vmem:[%s3693_s0 + $0x18] sm:$0xf]  ;;  %v488_v49 = vshrl.u32 %v2716_v45, 16  ;;  %v491_v50 = vshll.u32 %v2716_v45, 16  ;;  %v471_v51 = vrot.slane %v469_v43, 5  ;;  %v476_v52 = vrot.slane %v474_v41, 4 }
   0xe   :  { %v479_v53 = vrot.slane %v477_v42, 5  ;;  %v485_v54 = vrot.slane %v483_v44, 5  ;;  %v20_v55 = vld [vmem:[%s3693_s0 + $0x14] sm:$0x1]  ;;  %v466_v56 = vor.u32 %v465_v47, %v462_v46  ;;  %v2137_v57 = vcombine.low %v2716_v45, %v2721_v48  ;;  %v22_v60 = vld [vmem:[%s3693_s0 + $0x1c] sm:$0x1]  ;;  %2353 = vmatmul.mubr.msk.bf16.gmra.mxu0 %vm166_vm1, %v2123_v30 }
   0xf   :  { %v502_v58 = vshrl.u32 %v2721_v48, 16  ;;  %v505_v59 = vshll.u32 %v2721_v48, 16  ;;  %v120_v61 = vld [vmem:[%s3692_s1 + $0x6] sm:$0x3]  ;;  %v490_v0 = vrot.slane %v488_v49, 4  ;;  %v493_v1 = vrot.slane %v491_v50, 5 }
  0x10   :  { %v480_v63 = vor.u32 %v479_v53, %v476_v52  ;;  %v497_v3 = vshll.u32 %v20_v55, 16  ;;  %2514 = vmatprep.subr.msk.bf16.mxu1 %vm191_vm0, %v120_v61  ;;  %v121_v6 = vld [vmem:[%s3692_s1 + $0x8] sm:$0x3]  ;;  %2361 = vmatmul.mubr.msk.bf16.gmra.mxu1 %vm166_vm1, %v2127_v35  ;;  %v467_v8 = vrot.slane %v466_v56, 4  ;;  %v511_v15 = vshll.u32 %v22_v60, 16 }
  0x11   :  { %v504_v10 = vrot.slane %v502_v58, 4  ;;  %v507_v14 = vrot.slane %v505_v59, 5  ;;  %2515 = vmatprep.subr.msk.bf16.mxu0 %vm191_vm0, %v121_v6  ;;  %v2754_v16 = vld [vmem:[%s3693_s0 + $0x20] sm:$0xf]  ;;  %2366 = vmatprep.mubr.msk.bf16.mxu1 %vm166_vm1, %v2136_v36  ;;  %v494_v19 = vor.u32 %v493_v1, %v490_v0  ;;  %v912_v22 = vsel %vm191_vm0, %v120_v61, 0 }
  0x12   :  { %v481_v17 = vrot.slane %v480_v63, 4  ;;  %v499_v20 = vrot.slane %v497_v3, 5  ;;  %v2761_v23 = vld [vmem:[%s3693_s0 + $0x28] sm:$0xf]  ;;  %v472_v24 = vsel %vm2741_vm4, %v467_v8, %v471_v51  ;;  %v513_v26 = vrot.slane %v511_v15, 5 }
  0x13   :  { %v508_v25 = vor.u32 %v507_v14, %v504_v10  ;;  %v1092_v28 = vsel %vm191_vm0, %v121_v6, 0  ;;  %v495_v30 = vrot.slane %v494_v19, 4  ;;  %v2138_v31 = vcombine.low %v2754_v16, %v2761_v23  ;;  %v24_v35 = vld [vmem:[%s3693_s0 + $0x24] sm:$0x1]  ;;  %v26_v40 = vld [vmem:[%s3693_s0 + $0x2c] sm:$0x1] }
  0x14   :  { %v2768_v29 = vsel %vm2741_vm4, %v481_v17, %v485_v54  ;;  %v516_v32 = vshrl.u32 %v2754_v16, 16  ;;  %v519_v38 = vshll.u32 %v2754_v16, 16  ;;  %v530_v39 = vshrl.u32 %v2761_v23, 16  ;;  %v2792_v46 = vld [vmem:[%s3693_s0 + $0x30] sm:$0xf] }
  0x15   :  { %3724 = vst [vmem:[#allocation10_spill] sm:$0xff] %v2768_v29  ;;  %v2152_v36 = vcombine.low %v472_v24, %v2768_v29  ;;  %v509_v37 = vrot.slane %v508_v25, 4  ;;  %v2784_v41 = vsel %vm2741_vm4, %v495_v30, %v499_v20  ;;  %v533_v42 = vshll.u32 %v2761_v23, 16  ;;  %v2802_v52 = vld [vmem:[%s3693_s0 + $0x38] sm:$0xf] }
  0x16   :  { %3725 = vst [vmem:[#allocation11_spill] sm:$0xff] %v2784_v41  ;;  %v518_v44 = vrot.slane %v516_v32, 4  ;;  %v521_v49 = vrot.slane %v519_v38, 5  ;;  %v525_v50 = vshll.u32 %v24_v35, 16  ;;  %v532_v51 = vrot.slane %v530_v39, 4  ;;  %3727 = vst [vmem:[#allocation13_spill] sm:$0xff] %v2802_v52 }
  0x17   :  { %2384 = vmatprep.mubr.msk.bf16.mxu0 %vm166_vm1, %v2152_v36  ;;  %v2797_v47 = vsel %vm2741_vm4, %v509_v37, %v513_v26  ;;  %v535_v54 = vrot.slane %v533_v42, 5  ;;  %v539_v55 = vshll.u32 %v26_v40, 16  ;;  %v2139_v56 = vcombine.low %v2792_v46, %v2802_v52  ;;  %v28_v58 = vld [vmem:[%s3693_s0 + $0x34] sm:$0x1]  ;;  %v30_v0 = vld [vmem:[%s3693_s0 + $0x3c] sm:$0x1] }
  0x18   :  { %3726 = vst [vmem:[#allocation12_spill] sm:$0xff] %v2797_v47  ;;  %v2153_v53 = vcombine.low %v2784_v41, %v2797_v47  ;;  %2367 = vmatmul.mubr.msk.bf16.vlgmr.msra.gmra.mxu1 %vm166_vm1, %v2137_v57  ;;  %v522_v59 = vor.u32 %v521_v49, %v518_v44  ;;  %v527_v60 = vrot.slane %v525_v50, 5  ;;  %v544_v61 = vshrl.u32 %v2792_v46, 16  ;;  %v33_v17 = vld [vmem:[%s3693_s0 + $0x48] sm:$0xf] }
  0x19   :  { %v547_v63 = vshll.u32 %v2792_v46, 16  ;;  %2401 = vmatpush3.bf16.msra.mxu1 %v912_v22  ;;  %v536_v1 = vor.u32 %v535_v54, %v532_v51  ;;  %v541_v3 = vrot.slane %v539_v55, 5  ;;  %v558_v6 = vshrl.u32 %v2802_v52, 16  ;;  %2370 = vmatprep.mubr.msk.bf16.mxu1 %vm166_vm1, %v2138_v31  ;;  %v2827_v25 = vld [vmem:[%s3693_s0 + $0x50] sm:$0xf] }
  0x1a   :  { %2385 = vmatmul.mubr.msk.bf16.vlgmr.msra.gmra.mxu0 %vm166_vm1, %v2153_v53  ;;  %v561_v8 = vshll.u32 %v2802_v52, 16  ;;  %v523_v57 = vrot.slane %v522_v59, 4  ;;  %v546_v10 = vrot.slane %v544_v61, 4  ;;  %v553_v15 = vshll.u32 %v28_v58, 16  ;;  %v34_v32 = vld [vmem:[%s3693_s0 + $0x4c] sm:$0x1] }
  0x1b   :  { %2419 = vmatpush3.bf16.msra.mxu0 %v1092_v28  ;;  %v549_v14 = vrot.slane %v547_v63, 5  ;;  %v537_v19 = vrot.slane %v536_v1, 4  ;;  %v560_v20 = vrot.slane %v558_v6, 4  ;;  %v567_v24 = vshll.u32 %v30_v0, 16  ;;  %v36_v39 = vld [vmem:[%s3693_s0 + $0x54] sm:$0x1] }
  0x1c   :  { %v563_v22 = vrot.slane %v561_v8, 5  ;;  %v2831_v26 = vsel %vm2741_vm4, %v523_v57, %v527_v60  ;;  %v555_v30 = vrot.slane %v553_v15, 5  ;;  %v2140_v31 = vcombine.low %v33_v17, %v2827_v25  ;;  %v2851_v50 = vld [vmem:[%s3693_s0 + $0x58] sm:$0xf]  ;;  %v2858_v58 = vld [vmem:[%s3693_s0 + $0x60] sm:$0xf] }
  0x1d   :  { %3728 = vst [vmem:[#allocation14_spill] sm:$0xff] %v2831_v26  ;;  %v550_v28 = vor.u32 %v549_v14, %v546_v10  ;;  %v2839_v35 = vsel %vm2741_vm4, %v537_v19, %v541_v3  ;;  %v569_v38 = vrot.slane %v567_v24, 5  ;;  %v572_v44 = vshrl.u32 %v33_v17, 16  ;;  %v38_v0 = vld [vmem:[%s3693_s0 + $0x5c] sm:$0x1] }
  0x1e   :  { %3729 = vst [vmem:[#allocation15_spill] sm:$0xff] %v2839_v35  ;;  %v564_v37 = vor.u32 %v563_v22, %v560_v20  ;;  %v2154_v40 = vcombine.low %v2831_v26, %v2839_v35  ;;  %v575_v49 = vshll.u32 %v33_v17, 16  ;;  %v586_v53 = vshrl.u32 %v2827_v25, 16  ;;  %v40_v8 = vld [vmem:[%s3693_s0 + $0x64] sm:$0x1] }
  0x1f   :  { %v551_v42 = vrot.slane %v550_v28, 4  ;;  %v589_v54 = vshll.u32 %v2827_v25, 16  ;;  %v581_v55 = vshll.u32 %v34_v32, 16  ;;  %v574_v60 = vrot.slane %v572_v44, 4  ;;  %v2884_v17 = vld [vmem:[%s3693_s0 + $0x68] sm:$0xf] }
  0x20   :  { %v565_v51 = vrot.slane %v564_v37, 4  ;;  %2388 = vmatprep.mubr.msk.bf16.mxu0 %vm166_vm1, %v2154_v40  ;;  %2371 = vmatmul.mubr.msk.bf16.gmra.mxu1 %vm166_vm1, %v2139_v56  ;;  %v577_v61 = vrot.slane %v575_v49, 5  ;;  %v595_v63 = vshll.u32 %v36_v39, 16  ;;  %v588_v6 = vrot.slane %v586_v53, 4  ;;  %v2892_v28 = vld [vmem:[%s3693_s0 + $0x70] sm:$0xf] }
  0x21   :  { %v2864_v59 = vsel %vm2741_vm4, %v551_v42, %v555_v30  ;;  %2374 = vmatprep.mubr.msk.bf16.mxu1 %vm166_vm1, %v2140_v31  ;;  %v583_v3 = vrot.slane %v581_v55, 5  ;;  %v591_v56 = vrot.slane %v589_v54, 5  ;;  %v2141_v15 = vcombine.low %v2851_v50, %v2858_v58  ;;  %v42_v44 = vld [vmem:[%s3693_s0 + $0x6c] sm:$0x1]  ;;  %v44_v55 = vld [vmem:[%s3693_s0 + $0x74] sm:$0x1] }
  0x22   :  { %3730 = vst [vmem:[#allocation16_spill] sm:$0xff] %v2864_v59  ;;  %v2871_v1 = vsel %vm2741_vm4, %v565_v51, %v569_v38  ;;  %v578_v10 = vor.u32 %v577_v61, %v574_v60  ;;  %v597_v14 = vrot.slane %v595_v63, 5  ;;  %v600_v20 = vshrl.u32 %v2851_v50, 16  ;;  %v3051_v11 = vld [vmem:[%s3693_s0 + $0x180] sm:$0xf] }
  0x23   :  { %3731 = vst [vmem:[#allocation17_spill] sm:$0xff] %v2871_v1  ;;  %v2155_v57 = vcombine.low %v2864_v59, %v2871_v1  ;;  %v592_v19 = vor.u32 %v591_v56, %v588_v6  ;;  %v603_v22 = vshll.u32 %v2851_v50, 16  ;;  %v614_v24 = vshrl.u32 %v2858_v58, 16  ;;  %v3059_v47 = vld [vmem:[%s3693_s0 + $0x188] sm:$0xf] }
  0x24   :  { %v579_v30 = vrot.slane %v578_v10, 4  ;;  %v617_v31 = vshll.u32 %v2858_v58, 16  ;;  %v609_v32 = vshll.u32 %v38_v0, 16  ;;  %v623_v37 = vshll.u32 %v40_v8, 16  ;;  %v2923_v10 = vld [vmem:[%s3693_s0 + $0x80] sm:$0xf] }
  0x25   :  { %2389 = vmatmul.mubr.msk.bf16.gmra.mxu0 %vm166_vm1, %v2155_v57  ;;  %v593_v38 = vrot.slane %v592_v19, 4  ;;  %v602_v39 = vrot.slane %v600_v20, 4  ;;  %v605_v40 = vrot.slane %v603_v22, 5  ;;  %v616_v42 = vrot.slane %v614_v24, 4  ;;  %3732 = vst [vmem:[#allocation18_spill] sm:$0xff] %v2923_v10 }
  0x26   :  { %v584_v49 = vsel %vm2741_vm4, %v579_v30, %v583_v3  ;;  %v611_v51 = vrot.slane %v609_v32, 5  ;;  %v619_v53 = vrot.slane %v617_v31, 5  ;;  %v625_v54 = vrot.slane %v623_v37, 5  ;;  %v2914_v3 = vld [vmem:[%s3693_s0 + $0x78] sm:$0xf] }
  0x27   :  { %v2906_v60 = vsel %vm2741_vm4, %v593_v38, %v597_v14  ;;  %v606_v61 = vor.u32 %v605_v40, %v602_v39  ;;  %v2142_v63 = vcombine.low %v2884_v17, %v2892_v28  ;;  %v628_v0 = vshrl.u32 %v2884_v17, 16  ;;  %v2935_v37 = vld [vmem:[%s3692_s1 + $0xc] sm:$0x3]  ;;  %v74_v7 = vld [vmem:[%s3693_s0 + $0x134] sm:$0x1] }
  0x28   :  { %v2156_v6 = vcombine.low %v584_v49, %v2906_v60  ;;  %2375 = vmatmul.mubr.msk.bf16.gmra.mxu1 %vm166_vm1, %v2141_v15  ;;  %v620_v56 = vor.u32 %v619_v53, %v616_v42  ;;  %v631_v8 = vshll.u32 %v2884_v17, 16  ;;  %v642_v57 = vshrl.u32 %v2892_v28, 16  ;;  %v122_v15 = vld [vmem:[%s3692_s1 + $0xa] sm:$0x3]  ;;  %v48_v49 = vld [vmem:[%s3693_s0 + $0x84] sm:$0x1]  ;;  %2517 = vmatprep.subr.msk.bf16.mxu0 %vm191_vm0, %v2935_v37 }
  0x29   :  { %v607_v14 = vrot.slane %v606_v61, 4  ;;  %2378 = vmatprep.mubr.msk.bf16.mxu1 %vm166_vm1, %v2142_v63  ;;  %v645_v19 = vshll.u32 %v2892_v28, 16  ;;  %v630_v20 = vrot.slane %v628_v0, 4  ;;  %v637_v22 = vshll.u32 %v42_v44, 16  ;;  %2516 = vmatprep.subr.msk.bf16.mxu1 %vm191_vm0, %v122_v15  ;;  %v46_v44 = vld [vmem:[%s3693_s0 + $0x7c] sm:$0x1] }
  0x2a   :  { %2392 = vmatprep.mubr.msk.bf16.mxu0 %vm166_vm1, %v2156_v6  ;;  %v621_v24 = vrot.slane %v620_v56, 4  ;;  %v633_v30 = vrot.slane %v631_v8, 5  ;;  %v644_v31 = vrot.slane %v642_v57, 4  ;;  %v651_v32 = vshll.u32 %v44_v55, 16  ;;  %v69_v8 = vld [vmem:[%s3693_s0 + $0x120] sm:$0xf] }
  0x2b   :  { %v2939_v38 = vsel %vm2741_vm4, %v607_v14, %v611_v51  ;;  %v639_v39 = vrot.slane %v637_v22, 5  ;;  %v647_v40 = vrot.slane %v645_v19, 5  ;;  %v2143_v42 = vcombine.low %v2914_v3, %v2923_v10  ;;  %v76_v5 = vld [vmem:[%s3693_s0 + $0x13c] sm:$0x1] }
  0x2c   :  { %v2953_v51 = vsel %vm2741_vm4, %v621_v24, %v625_v54  ;;  %v634_v53 = vor.u32 %v633_v30, %v630_v20  ;;  %v653_v55 = vrot.slane %v651_v32, 5  ;;  %v656_v61 = vshrl.u32 %v2914_v3, 16  ;;  %v71_v54 = vld [vmem:[%s3693_s0 + $0x128] sm:$0xf] }
  0x2d   :  { %v2157_v63 = vcombine.low %v2939_v38, %v2953_v51  ;;  %v648_v0 = vor.u32 %v647_v40, %v644_v31  ;;  %v659_v6 = vshll.u32 %v2914_v3, 16  ;;  %v670_v56 = vshrl.u32 %v2923_v10, 16 }
  0x2e   :  { %v635_v57 = vrot.slane %v634_v53, 4  ;;  %v673_v14 = vshll.u32 %v2923_v10, 16  ;;  %v658_v19 = vrot.slane %v656_v61, 4  ;;  %v665_v20 = vshll.u32 %v46_v44, 16 }
  0x2f   :  { %2393 = vmatmul.mubr.msk.bf16.gmra.mxu0 %vm166_vm1, %v2157_v63  ;;  %v649_v22 = vrot.slane %v648_v0, 4  ;;  %v661_v24 = vrot.slane %v659_v6, 5  ;;  %v672_v30 = vrot.slane %v670_v56, 4  ;;  %v679_v31 = vshll.u32 %v48_v49, 16  ;;  %v73_v63 = vld [vmem:[%s3693_s0 + $0x130] sm:$0xf] }
  0x30   :  { %v2970_v32 = vsel %vm2741_vm4, %v635_v57, %v639_v39  ;;  %2379 = vmatmul.mubr.msk.bf16.gmra.mxu1 %vm166_vm1, %v2143_v42  ;;  %v675_v40 = vrot.slane %v673_v14, 5  ;;  %v2168_v18 = vcombine.low %v69_v8, %v71_v54  ;;  %v667_v44 = vrot.slane %v665_v20, 5  ;;  %v75_v49 = vld [vmem:[%s3693_s0 + $0x138] sm:$0xf]  ;;  %v77_v14 = vld [vmem:[%s3693_s0 + $0x140] sm:$0xf] }
  0x31   :  { %v2975_v53 = vsel %vm2741_vm4, %v649_v22, %v653_v55  ;;  %v662_v61 = vor.u32 %v661_v24, %v658_v19  ;;  %v681_v0 = vrot.slane %v679_v31, 5  ;;  %v2169_v56 = vcombine.low %v73_v63, %v75_v49  ;;  %v79_v19 = vld [vmem:[%s3693_s0 + $0x148] sm:$0xf]  ;;  %v2541_v22 = vld [vmem:[%s3693_s0 + $0x1b0] ss:$8 sps:$4 sm:$0xff]  }
  0x32   :  { %v2158_v39 = vcombine.low %v2970_v32, %v2975_v53  ;;  %v676_v42 = vor.u32 %v675_v40, %v672_v30  ;;  %2402 = vmatprep.mubr.msk.bf16.mxu1 %vm166_vm1, %v2168_v18  ;;  %v1208_v20 = vshrl.u32 %v69_v8, 16  ;;  %v1480_v24 = vsel %vm191_vm0, %v122_v15, 0  ;;  %v83_v15 = vld [vmem:[%s3693_s0 + $0x158] sm:$0xf] }
  0x33   :  { %v663_v6 = vrot.slane %v662_v61, 4  ;;  %v1211_v31 = vshll.u32 %v69_v8, 16  ;;  %v1222_v40 = vshrl.u32 %v71_v54, 16  ;;  %v1225_v61 = vshll.u32 %v71_v54, 16  ;;  %v85_v54 = vld [vmem:[%s3693_s0 + $0x168] sm:$0xf] }
  0x34   :  { %2396 = vmatprep.mubr.msk.bf16.mxu0 %vm166_vm1, %v2158_v39  ;;  %v677_v55 = vrot.slane %v676_v42, 4  ;;  %v2170_v39 = vcombine.low %v77_v14, %v79_v19  ;;  %v81_v42 = vld [vmem:[%s3693_s0 + $0x150] sm:$0xf]  ;;  %v1239_v8 = vshll.u32 %v73_v63, 16  ;;  %v1264_v36 = vshrl.u32 %v77_v14, 16 }
  0x35   :  { %v2989_v57 = vsel %vm2741_vm4, %v663_v6, %v667_v44  ;;  %v1236_v44 = vshrl.u32 %v73_v63, 16  ;;  %v87_v6 = vld [vmem:[%s3693_s0 + $0x170] sm:$0xf]  ;;  %v2543_v63 = vld [vmem:[%s3693_s0 + $0x1c0] ss:$8 sps:$4 sm:$0xff]   ;;  %v2171_v34 = vcombine.low %v81_v42, %v83_v15  ;;  %v1267_v12 = vshll.u32 %v77_v14, 16 }
  0x36   :  { %v2999_v18 = vsel %vm2741_vm4, %v677_v55, %v681_v0  ;;  %v1250_v0 = vshrl.u32 %v75_v49, 16  ;;  %v3023_v55 = vrot.slane %v1208_v20, 4  ;;  %v1278_v9 = vshrl.u32 %v79_v19, 16  ;;  %v2545_v20 = vld [vmem:[%s3693_s0 + $0x1d0] ss:$8 sps:$4 sm:$0xff]  }
  0x37   :  { %3733 = vst [vmem:[#allocation19_spill] sm:$0xff] %v2999_v18  ;;  %v2159_v30 = vcombine.low %v2989_v57, %v2999_v18  ;;  %v1281_v43 = vshll.u32 %v79_v19, 16  ;;  %v1292_v18 = vshrl.u32 %v81_v42, 16  ;;  %v1295_v1 = vshll.u32 %v81_v42, 16 }
  0x38   :  { %2403 = vmatmul.mubr.msk.bf16.vlgmr.msra.gmra.mxu1 %vm166_vm1, %v2169_v56  ;;  %v3025_v56 = vrot.slane %v1211_v31, 5  ;;  %v2172_v31 = vcombine.low %v85_v54, %v87_v6  ;;  %v1632_v14 = vsel %vm191_vm0, %v2935_v37, 0  ;;  %v1309_v19 = vshll.u32 %v83_v15, 16 }
  0x39   :  { %2397 = vmatmul.mubr.msk.bf16.gmra.mxu0 %vm166_vm1, %v2159_v30  ;;  %2437 = vmatpush3.bf16.msra.mxu1 %v1480_v24  ;;  %v3027_v24 = vrot.slane %v1222_v40, 4  ;;  %v3029_v30 = vrot.slane %v1225_v61, 5  ;;  %v3039_v40 = vrot.slane %v1239_v8, 5  ;;  %v3041_v61 = vrot.slane %v1250_v0, 4 }
  0x3a   :  { %2420 = vmatprep.mubr.msk.bf16.mxu0 %vm166_vm1, %v2541_v22  ;;  %2406 = vmatprep.mubr.msk.bf16.mxu1 %vm166_vm1, %v2170_v39  ;;  %v3034_v22 = vrot.slane %v1236_v44, 4  ;;  %v1253_v39 = vshll.u32 %v75_v49, 16  ;;  %v89_v49 = vld [vmem:[%s3693_s0 + $0x178] sm:$0xf]  ;;  %v1306_v44 = vshrl.u32 %v83_v15, 16  ;;  %v1320_v13 = vshrl.u32 %v85_v54, 16 }
  0x3b   :  { %v1323_v42 = vshll.u32 %v85_v54, 16  ;;  %v1334_v0 = vshrl.u32 %v87_v6, 16  ;;  %v1337_v26 = vshll.u32 %v87_v6, 16  ;;  %v3062_v37 = vrot.slane %v1264_v36, 4  ;;  %v2547_v36 = vld [vmem:[%s3693_s0 + $0x1e0] ss:$8 sps:$4 sm:$0xff]  }
  0x3c   :  { %v3053_v8 = vrot.slane %v1253_v39, 5  ;;  %v3064_v15 = vrot.slane %v1267_v12, 5  ;;  %v3066_v35 = vrot.slane %v1278_v9, 4  ;;  %v3068_v39 = vrot.slane %v1281_v43, 5  ;;  %v3079_v12 = vld [vmem:[%s3693_s0 + $0x190] sm:$0xf] }
  0x3d   :  { %v3074_v54 = vrot.slane %v1295_v1, 5  ;;  %v1348_v6 = vshrl.u32 %v89_v49, 16  ;;  %v1351_v59 = vshll.u32 %v89_v49, 16  ;;  %v3081_v9 = vrot.slane %v1306_v44, 4  ;;  %v2549_v44 = vld [vmem:[%s3693_s0 + $0x1f8] ss:$8 sps:$4 sm:$0xff]  }
  0x3e   :  { %v3083_v43 = vrot.slane %v1309_v19, 5  ;;  %v2173_v1 = vcombine.low %v89_v49, %v3051_v11  ;;  %v1362_v19 = vshrl.u32 %v3051_v11, 16  ;;  %v2174_v49 = vcombine.low %v3059_v47, %v3079_v12 }
  0x3f   :  { %v1228_v21 = vor.u32 %v3029_v30, %v3027_v24  ;;  %v3129_v29 = vrot.slane %v1348_v6, 4  ;;  %v3131_v41 = vrot.slane %v1351_v59, 5  ;;  %v1242_v4 = vor.u32 %v3039_v40, %v3034_v22  ;;  %v3147_v59 = vld [vmem:[%s3692_s1 + $0x10] sm:$0x3] }
  0x40   :  { %2407 = vmatmul.mubr.msk.bf16.gmra.mxu1 %vm166_vm1, %v2171_v34  ;;  %v3072_v34 = vrot.slane %v1292_v18, 4  ;;  %v70_v18 = vld [vmem:[%s3693_s0 + $0x124] sm:$0x1]  ;;  %v3158_v22 = vrot.slane %v1362_v19, 4  ;;  %v1365_v40 = vshll.u32 %v3051_v11, 16 }
  0x41   :  { %2421 = vmatmul.mubr.msk.bf16.vlgmr.msra.gmra.mxu0 %vm166_vm1, %v2543_v63  ;;  %2410 = vmatprep.mubr.msk.bf16.mxu1 %vm166_vm1, %v2172_v31  ;;  %v3088_v63 = vrot.slane %v1320_v13, 4  ;;  %v3096_v31 = vrot.slane %v1334_v0, 4  ;;  %v72_v13 = vld [vmem:[%s3693_s0 + $0x12c] sm:$0x1]  ;;  %v1214_v0 = vor.u32 %v3025_v56, %v3023_v55  ;;  %v1217_v27 = vshll.u32 %v70_v18, 16 }
  0x42   :  { %2455 = vmatpush3.bf16.msra.mxu0 %v1632_v14  ;;  %2424 = vmatprep.mubr.msk.bf16.mxu0 %vm166_vm1, %v2545_v20  ;;  %v3094_v20 = vrot.slane %v1323_v42, 5  ;;  %v3098_v14 = vrot.slane %v1337_v26, 5  ;;  %v3112_v42 = vld [vmem:[%s3693_s0 + $0x198] sm:$0xf]  ;;  %v3117_v26 = vld [vmem:[%s3693_s0 + $0x1a0] sm:$0xf] }
  0x43   :  { %v1231_v10 = vshll.u32 %v72_v13, 16  ;;  %v3138_v56 = vld [vmem:[%s3692_s1 + $0xe] sm:$0x3]  ;;  %v1215_v24 = vrot.slane %v1214_v0, 4  ;;  %v1219_v30 = vrot.slane %v1217_v27, 5  ;;  %v1229_v18 = vrot.slane %v1228_v21, 4  ;;  %2519 = vmatprep.subr.msk.bf16.mxu0 %vm191_vm0, %v3147_v59 }
  0x44   :  { %2518 = vmatprep.subr.msk.bf16.mxu1 %vm191_vm0, %v3138_v56  ;;  %v1245_v13 = vshll.u32 %v74_v7, 16  ;;  %v1256_v0 = vor.u32 %v3053_v8, %v3041_v61  ;;  %v1259_v27 = vshll.u32 %v76_v5, 16  ;;  %v78_v21 = vld [vmem:[%s3693_s0 + $0x144] sm:$0x1]  ;;  %v1376_v7 = vshrl.u32 %v3059_v47, 16 }
  0x45   :  { %v1233_v6 = vrot.slane %v1231_v10, 5  ;;  %v1379_v10 = vshll.u32 %v3059_v47, 16  ;;  %v80_v5 = vld [vmem:[%s3693_s0 + $0x14c] sm:$0x1]  ;;  %v2175_v61 = vcombine.low %v3112_v42, %v3117_v26  ;;  %v1220_v8 = vsel %vm2741_vm4, %v1215_v24, %v1219_v30 }
  0x46   :  { %v1270_v47 = vor.u32 %v3064_v15, %v3062_v37  ;;  %v1273_v19 = vshll.u32 %v78_v21, 16  ;;  %v1257_v55 = vrot.slane %v1256_v0, 4  ;;  %v1261_v2 = vrot.slane %v1259_v27, 5  ;;  %v2551_v37 = vld [vmem:[%s3693_s0 + $0x208] ss:$8 sps:$4 sm:$0xff]  }
  0x47   :  { %v1234_v11 = vsel %vm2741_vm4, %v1229_v18, %v1233_v6  ;;  %v1287_v52 = vshll.u32 %v80_v5, 16  ;;  %v2218_v24 = vcombine.low %v2761_v23, %v2792_v46  ;;  %v1390_v18 = vshrl.u32 %v3079_v12, 16  ;;  %v2553_v6 = vld [vmem:[%s3693_s0 + $0x218] ss:$8 sps:$4 sm:$0xff]  }
  0x48   :  { %2411 = vmatmul.mubr.msk.bf16.gmra.mxu1 %vm166_vm1, %v2173_v1  ;;  %v1247_v1 = vrot.slane %v1245_v13, 5  ;;  %v2200_v15 = vcombine.low %v1220_v8, %v1234_v11  ;;  %v1298_v0 = vor.u32 %v3074_v54, %v3072_v34  ;;  %v3195_v21 = vrot.slane %v1365_v40, 5  ;;  %v88_v54 = vld [vmem:[%s3693_s0 + $0x174] sm:$0x1] }
  0x49   :  { %2425 = vmatmul.mubr.msk.bf16.gmra.mxu0 %vm166_vm1, %v2547_v36  ;;  %2414 = vmatprep.mubr.msk.bf16.mxu1 %vm166_vm1, %v2174_v49  ;;  %v1243_v36 = vrot.slane %v1242_v4, 4  ;;  %v1284_v49 = vor.u32 %v3068_v39, %v3066_v35  ;;  %v84_v4 = vld [vmem:[%s3693_s0 + $0x15c] sm:$0x1]  ;;  %v1271_v35 = vrot.slane %v1270_v47, 4  ;;  %v1275_v39 = vrot.slane %v1273_v19, 5 }
  0x4a   :  { %2428 = vmatprep.mubr.msk.bf16.mxu0 %vm166_vm1, %v2549_v44  ;;  %v82_v44 = vld [vmem:[%s3693_s0 + $0x154] sm:$0x1]  ;;  %v1289_v13 = vrot.slane %v1287_v52, 5  ;;  %v1393_v5 = vshll.u32 %v3079_v12, 16  ;;  %v1312_v8 = vor.u32 %v3083_v43, %v3081_v9  ;;  %v1315_v11 = vshll.u32 %v84_v4, 16 }
  0x4b   :  { %v1285_v30 = vrot.slane %v1284_v49, 4  ;;  %v1301_v27 = vshll.u32 %v82_v44, 16  ;;  %v86_v47 = vld [vmem:[%s3693_s0 + $0x16c] sm:$0x1]  ;;  %v3203_v19 = vrot.slane %v1376_v7, 4  ;;  %v3205_v49 = vrot.slane %v1379_v10, 5 }
  0x4c   :  { %v1404_v52 = vshrl.u32 %v3112_v42, 16  ;;  %v1248_v34 = vsel %vm2741_vm4, %v1243_v36, %v1247_v1  ;;  %v1262_v12 = vsel %vm2741_vm4, %v1257_v55, %v1261_v2  ;;  %v1276_v9 = vsel %vm2741_vm4, %v1271_v35, %v1275_v39 }
  0x4d   :  { %v1290_v43 = vsel %vm2741_vm4, %v1285_v30, %v1289_v13  ;;  %v1299_v40 = vrot.slane %v1298_v0, 4  ;;  %v1303_v7 = vrot.slane %v1301_v27, 5  ;;  %v1326_v10 = vor.u32 %v3094_v20, %v3088_v63 }
  0x4e   :  { %v1340_v36 = vor.u32 %v3098_v14, %v3096_v31  ;;  %v1313_v1 = vrot.slane %v1312_v8, 4  ;;  %v1317_v44 = vrot.slane %v1315_v11, 5  ;;  %v1343_v2 = vshll.u32 %v88_v54, 16  ;;  %v90_v31 = vld [vmem:[%s3693_s0 + $0x17c] sm:$0x1] }
  0x4f   :  { %v2220_v55 = vcombine.low %v2827_v25, %v2851_v50  ;;  %v1392_v4 = vrot.slane %v1390_v18, 4  ;;  %v2201_v35 = vcombine.low %v1248_v34, %v1262_v12  ;;  %v1784_v63 = vsel %vm191_vm0, %v3138_v56, 0  ;;  %v92_v14 = vld [vmem:[%s3693_s0 + $0x184] sm:$0x1]  ;;  %v94_v8 = vld [vmem:[%s3693_s0 + $0x18c] sm:$0x1] }
  0x50   :  { %2415 = vmatmul.mubr.msk.bf16.gmra.mxu1 %vm166_vm1, %v2175_v61  ;;  %v1329_v61 = vshll.u32 %v86_v47, 16  ;;  %v1327_v20 = vrot.slane %v1326_v10, 4  ;;  %v2202_v30 = vcombine.low %v1276_v9, %v1290_v43  ;;  %v1341_v18 = vrot.slane %v1340_v36, 4  ;;  %v96_v11 = vld [vmem:[%s3693_s0 + $0x194] sm:$0x1]  ;;  %v3740_v50 = vld [vmem:[#allocation18_spill] sm:$0xff] }
  0x51   :  { %2429 = vmatmul.mubr.msk.bf16.gmra.mxu0 %vm166_vm1, %v2551_v37  ;;  %2438 = vmatprep.mubr.msk.bf16.mxu1 %vm166_vm1, %v2200_v15  ;;  %v1395_v37 = vrot.slane %v1393_v5, 5  ;;  %v2555_v15 = vld [vmem:[%s3693_s0 + $0x228] ss:$8 sps:$4 sm:$0xff]   ;;  %v2221_v13 = vcombine.low %v2858_v58, %v2884_v17  ;;  %v1407_v0 = vshll.u32 %v3112_v42, 16  ;;  %v1418_v56 = vshrl.u32 %v3117_v26, 16  ;;  %v3742_v17 = vld [vmem:[#allocation10_spill] sm:$0xff] }
  0x52   :  { %2432 = vmatprep.mubr.msk.bf16.mxu0 %vm166_vm1, %v2553_v6  ;;  %v1331_v39 = vrot.slane %v1329_v61, 5  ;;  %v1345_v6 = vrot.slane %v1343_v2, 5  ;;  %v1304_v27 = vsel %vm2741_vm4, %v1299_v40, %v1303_v7  ;;  %v1318_v5 = vsel %vm2741_vm4, %v1313_v1, %v1317_v44  ;;  %v49_v25 = vld [vmem:[%s3693_s0 + $0x88] sm:$0xf] }
  0x53   :  { %v1354_v42 = vor.u32 %v3131_v41, %v3129_v29  ;;  %v1357_v47 = vshll.u32 %v90_v31, 16  ;;  %v1368_v34 = vor.u32 %v3195_v21, %v3158_v22  ;;  %v1371_v54 = vshll.u32 %v92_v14, 16  ;;  %v31_v31 = vld [vmem:[%s3693_s0 + $0x40] sm:$0xf]  ;;  %v3741_v58 = vld [vmem:[#allocation11_spill] sm:$0xff] }
  0x54   :  { %v1421_v12 = vshll.u32 %v3117_v26, 16  ;;  %v1332_v9 = vsel %vm2741_vm4, %v1327_v20, %v1331_v39  ;;  %v1382_v43 = vor.u32 %v3205_v49, %v3203_v19  ;;  %v2222_v40 = vcombine.low %v2892_v28, %v2914_v3 }
  0x55   :  { %v3734_v29 = vcombine.low %v2698_v33, %v2716_v45  ;;  %v1346_v41 = vsel %vm2741_vm4, %v1341_v18, %v1345_v6  ;;  %v1385_v26 = vshll.u32 %v94_v8, 16  ;;  %v1396_v22 = vor.u32 %v1395_v37, %v1392_v4  ;;  %v98_v45 = vld [vmem:[%s3693_s0 + $0x19c] sm:$0x1] }
  0x56   :  { %v1399_v21 = vshll.u32 %v96_v11, 16  ;;  %v1406_v7 = vrot.slane %v1404_v52, 4  ;;  %v1409_v10 = vrot.slane %v1407_v0, 5  ;;  %v2203_v61 = vcombine.low %v1304_v27, %v1318_v5  ;;  %v100_v52 = vld [vmem:[%s3693_s0 + $0x1a4] sm:$0x1] }
  0x57   :  { %v1355_v19 = vrot.slane %v1354_v42, 4  ;;  %v1359_v49 = vrot.slane %v1357_v47, 5  ;;  %v1369_v36 = vrot.slane %v1368_v34, 4  ;;  %v1373_v28 = vrot.slane %v1371_v54, 5  ;;  %v3737_v54 = vld [vmem:[#allocation2_spill] sm:$0xff] }
  0x58   :  { %2439 = vmatmul.mubr.msk.bf16.vlgmr.msra.gmra.mxu1 %vm166_vm1, %v2201_v35  ;;  %v1420_v3 = vrot.slane %v1418_v56, 4  ;;  %v1423_v1 = vrot.slane %v1421_v12, 5  ;;  %v2204_v33 = vcombine.low %v1332_v9, %v1346_v41  ;;  %v1383_v44 = vrot.slane %v1382_v43, 4  ;;  %v3736_v56 = vld [vmem:[#allocation13_spill] sm:$0xff]  ;;  %v3738_v12 = vld [vmem:[#allocation3_spill] sm:$0xff] }
  0x59   :  { %2433 = vmatmul.mubr.msk.bf16.gmra.mxu0 %vm166_vm1, %v2555_v15  ;;  %2473 = vmatpush3.bf16.msra.mxu1 %v1784_v63  ;;  %v1387_v2 = vrot.slane %v1385_v26, 5  ;;  %v1397_v15 = vrot.slane %v1396_v22, 4  ;;  %v1401_v35 = vrot.slane %v1399_v21, 5  ;;  %v1962_v4 = vsel %vm191_vm0, %v3147_v59, 0  ;;  %v32_v22 = vld [vmem:[%s3693_s0 + $0x44] sm:$0x1] }
  0x5a   :  { %2456 = vmatprep.mubr.msk.bf16.mxu0 %vm166_vm1, %v3734_v29  ;;  %2442 = vmatprep.mubr.msk.bf16.mxu1 %vm166_vm1, %v2202_v30  ;;  %v1360_v37 = vsel %vm2741_vm4, %v1355_v19, %v1359_v49  ;;  %v1374_v63 = vsel %vm2741_vm4, %v1369_v36, %v1373_v28  ;;  %v1410_v20 = vor.u32 %v1409_v10, %v1406_v7  ;;  %v1413_v59 = vshll.u32 %v98_v45, 16  ;;  %v3743_v21 = vld [vmem:[#allocation4_spill] sm:$0xff]  ;;  %v3744_v7 = vld [vmem:[#allocation5_spill] sm:$0xff]  ;;  %v3750_v45 = vld [vmem:[#allocation15_spill] sm:$0xff] }
  0x5b   :  { %v3735_v39 = vcombine.low %v2721_v48, %v2754_v16  ;;  %v1424_v14 = vor.u32 %v1423_v1, %v1420_v3  ;;  %v1427_v30 = vshll.u32 %v100_v52, 16  ;;  %v2252_v18 = vcombine.low %v2906_v60, %v2939_v38  ;;  %v59_v49 = vld [vmem:[%s3693_s0 + $0xd0] sm:$0xf]  ;;  %v2568_v3 = vld [vmem:[%s3693_s0 + $0xc8] sm:$0xf]  ;;  %v3752_v52 = vld [vmem:[#allocation14_spill] sm:$0xff] }
  0x5c   :  { %v1388_v48 = vsel %vm2741_vm4, %v1383_v44, %v1387_v2  ;;  %v1402_v16 = vsel %vm2741_vm4, %v1397_v15, %v1401_v35  ;;  %v2253_v6 = vcombine.low %v2953_v51, %v2970_v32  ;;  %v2254_v0 = vcombine.low %v2975_v53, %v2989_v57  ;;  %v3751_v35 = vld [vmem:[#allocation12_spill] sm:$0xff]  ;;  %v3758_v38 = vld [vmem:[#allocation19_spill] sm:$0xff] }
  0x5d   :  { %v2219_v27 = vcombine.low %v3736_v56, %v31_v31  ;;  %v2205_v5 = vcombine.low %v1360_v37, %v1374_v63  ;;  %v1411_v8 = vrot.slane %v1410_v20, 4  ;;  %v2206_v11 = vcombine.low %v1388_v48, %v1402_v16  ;;  %v3754_v37 = vld [vmem:[#allocation6_spill] sm:$0xff]  ;;  %v3755_v63 = vld [vmem:[#allocation7_spill] sm:$0xff]  ;;  %v3757_v16 = vld [vmem:[#allocation17_spill] sm:$0xff] }
  0x5e   :  { %v1415_v23 = vrot.slane %v1413_v59, 5  ;;  %v1425_v46 = vrot.slane %v1424_v14, 4  ;;  %v3739_v9 = vcombine.low %v3737_v54, %v3738_v12  ;;  %v1900_v43 = vshrl.u32 %v31_v31, 16  ;;  %v2569_v14 = vld [vmem:[%s3693_s0 + $0xf0] sm:$0xf] }
  0x5f   :  { %v1903_v29 = vshll.u32 %v31_v31, 16  ;;  %v3745_v10 = vcombine.low %v3743_v21, %v3744_v7  ;;  %v1909_v28 = vshll.u32 %v32_v22, 16  ;;  %v2235_v1 = vcombine.low %v2568_v3, %v59_v49 }
  0x60   :  { %2443 = vmatmul.mubr.msk.bf16.gmra.mxu1 %vm166_vm1, %v2203_v61  ;;  %v1416_v42 = vsel %vm2741_vm4, %v1411_v8, %v1415_v23  ;;  %v1902_v41 = vrot.slane %v1900_v43, 4  ;;  %v3747_v61 = vld [vmem:[#allocation9_spill] sm:$0xff]  ;;  %v3756_v20 = vcombine.low %v3754_v37, %v3755_v63  ;;  %v1917_v31 = vshll.u32 %v49_v25, 16 }
  0x61   :  { %2457 = vmatmul.mubr.msk.bf16.vlgmr.msra.gmra.mxu0 %vm166_vm1, %v3735_v39  ;;  %2446 = vmatprep.mubr.msk.bf16.mxu1 %vm166_vm1, %v2204_v33  ;;  %v1905_v26 = vrot.slane %v1903_v29, 5  ;;  %v3749_v33 = vld [vmem:[#allocation16_spill] sm:$0xff]  ;;  %v1911_v15 = vrot.slane %v1909_v28, 5  ;;  %v1914_v39 = vshrl.u32 %v49_v25, 16 }
  0x62   :  { %2491 = vmatpush3.bf16.msra.mxu0 %v1962_v4  ;;  %2460 = vmatprep.mubr.msk.bf16.mxu0 %vm166_vm1, %v2218_v24  ;;  %v1429_v24 = vrot.slane %v1427_v30, 5  ;;  %v2250_v44 = vcombine.low %v3750_v45, %v3749_v33  ;;  %v3753_v4 = vcombine.low %v3751_v35, %v3752_v52  ;;  %v2570_v30 = vld [vmem:[%s3693_s0 + $0xf8] sm:$0xf]  ;;  %v1919_v23 = vrot.slane %v1917_v31, 5 }
  0x63   :  { %v1906_v36 = vor.u32 %v1905_v26, %v1902_v41  ;;  %v2237_v48 = vcombine.low %v2569_v14, %v2570_v30 }
  0x64   :  { %v1430_v47 = vsel %vm2741_vm4, %v1425_v46, %v1429_v24  ;;  %v50_v46 = vld [vmem:[%s3693_s0 + $0x8c] sm:$0x1]  ;;  %v68_v24 = vld [vmem:[%s3693_s0 + $0x118] sm:$0xf] }
  0x65   :  { %v2207_v34 = vcombine.low %v1416_v42, %v1430_v47  ;;  %v1907_v2 = vrot.slane %v1906_v36, 4  ;;  %v1923_v47 = vshll.u32 %v50_v46, 16 }
  0x67   :  { %v1912_v59 = vsel %vm2741_vm4, %v1907_v2, %v1911_v15 }
  0x68   :  { %2447 = vmatmul.mubr.msk.bf16.gmra.mxu1 %vm166_vm1, %v2205_v5  ;;  %v2251_v56 = vcombine.low %v3757_v16, %v1912_v59  ;;  %v2572_v5 = vld [vmem:[%s3693_s0 + $0x108] sm:$0xf] }
  0x69   :  { %2461 = vmatmul.mubr.msk.bf16.gmra.mxu0 %vm166_vm1, %v2219_v27  ;;  %2450 = vmatprep.mubr.msk.bf16.mxu1 %vm166_vm1, %v2206_v11  ;;  %v2571_v27 = vld [vmem:[%s3693_s0 + $0x100] sm:$0xf]  ;;  %v1916_v11 = vrot.slane %v1914_v39, 4 }
  0x6a   :  { %2464 = vmatprep.mubr.msk.bf16.mxu0 %vm166_vm1, %v2220_v55  ;;  %v2223_v55 = vcombine.low %v3740_v50, %v49_v25  ;;  %v2238_v8 = vcombine.low %v2571_v27, %v2572_v5 }
  0x6b   :  { %v1920_v42 = vor.u32 %v1919_v23, %v1916_v11 }
  0x6d   :  { %v1921_v12 = vrot.slane %v1920_v42, 4 }
  0x70   :  { %2451 = vmatmul.mubr.msk.bf16.gmra.mxu1 %vm166_vm1, %v2207_v34  ;;  %v2573_v34 = vld [vmem:[%s3693_s0 + $0x110] sm:$0xf] }
  0x71   :  { %2465 = vmatmul.mubr.msk.bf16.gmra.mxu0 %vm166_vm1, %v2221_v13  ;;  %2474 = vmatprep.mubr.msk.bf16.mxu1 %vm166_vm1, %v3739_v9  ;;  %v2248_v13 = vcombine.low %v3742_v17, %v3741_v58  ;;  %v2239_v54 = vcombine.low %v2573_v34, %v68_v24  ;;  %v1925_v9 = vrot.slane %v1923_v47, 5 }
  0x72   :  { %2468 = vmatprep.mubr.msk.bf16.mxu0 %vm166_vm1, %v2222_v40  ;;  %v3746_v40 = vld [vmem:[#allocation8_spill] sm:$0xff] }
  0x73   :  { %v3748_v19 = vcombine.low %v3746_v40, %v3747_v61  ;;  %v1926_v60 = vsel %vm2741_vm4, %v1921_v12, %v1925_v9 }
  0x78   :  { %2475 = vmatmul.mubr.msk.bf16.vlgmr.msra.gmra.mxu1 %vm166_vm1, %v3745_v10 }
  0x79   :  { %2469 = vmatmul.mubr.msk.bf16.gmra.mxu0 %vm166_vm1, %v2223_v55  ;;  %2478 = vmatprep.mubr.msk.bf16.mxu1 %vm166_vm1, %v3748_v19 }
  0x7a   :  { %2492 = vmatprep.mubr.msk.bf16.mxu0 %vm166_vm1, %v2248_v13 }
  0x80   :  { %2479 = vmatmul.mubr.msk.bf16.gmra.mxu1 %vm166_vm1, %v2235_v1 }
  0x81   :  { %2493 = vmatmul.mubr.msk.bf16.vlgmr.msra.gmra.mxu0 %vm166_vm1, %v3753_v4  ;;  %2482 = vmatprep.mubr.msk.bf16.mxu1 %vm166_vm1, %v3756_v20 }
  0x82   :  { %2496 = vmatprep.mubr.msk.bf16.mxu0 %vm166_vm1, %v2250_v44 }
  0x88   :  { %2483 = vmatmul.mubr.msk.bf16.gmra.mxu1 %vm166_vm1, %v2237_v48 }
  0x89   :  { %2497 = vmatmul.mubr.msk.bf16.gmra.mxu0 %vm166_vm1, %v2251_v56  ;;  %2486 = vmatprep.mubr.msk.bf16.mxu1 %vm166_vm1, %v2238_v8 }
  0x8a   :  { %2500 = vmatprep.mubr.msk.bf16.mxu0 %vm166_vm1, %v2252_v18  ;;  %v2255_v18 = vcombine.low %v3758_v38, %v1926_v60 }
  0x90   :  { %2487 = vmatmul.mubr.msk.bf16.gmra.mxu1 %vm166_vm1, %v2239_v54 }
  0x91   :  { %2501 = vmatmul.mubr.msk.bf16.gmra.mxu0 %vm166_vm1, %v2253_v6 }
  0x92   :  { %2504 = vmatprep.mubr.msk.bf16.mxu0 %vm166_vm1, %v2254_v0 }
  0x99   :  { %2505 = vmatmul.mubr.msk.bf16.gmra.mxu0 %vm166_vm1, %v2255_v18 }
  0xc6   :  { %v2350_v43 = vpop.f32.mrf.mxu0 }
  0xc8   :  { %v2358_v29 = vpop.f32.mrf.mxu1  ;;  %v229_v25 = vpop.f32.mrf.mxu0 }
  0xca   :  { %v261_v50 = vpop.f32.mrf.mxu1  ;;  %v2351_v55 = vpop.f32.mrf.mxu0 }
  0xcc   :  { %v2359_v51 = vpop.f32.mrf.mxu1  ;;  %v232_v32 = vpop.f32.mrf.mxu0 }
  0xce   :  { %v264_v6 = vpop.f32.mrf.mxu1  ;;  %v2354_v41 = vpop.f32.mrf.mxu0 }
  0xd0   :  { %v2362_v26 = vpop.f32.mrf.mxu1  ;;  %v245_v53 = vpop.f32.mrf.mxu0 }
  0xd2   :  { %v277_v57 = vpop.f32.mrf.mxu1  ;;  %v2355_v0 = vpop.f32.mrf.mxu0 }
  0xd4   :  { %v2363_v58 = vpop.f32.mrf.mxu1  ;;  %v248_v62 = vpop.f32.mrf.mxu0 }
  0xd6   :  { %v280_v17 = vpop.f32.mrf.mxu1 }
  0xd8   :  { %v2368_v13 = vpop.f32.mrf.mxu1 }
  0xd9   :  { %v402_v22 = vadd.f32 %v2368_v13, %v2350_v43 }
  0xda   :  { %v2386_v21 = vpop.f32.mrf.mxu0  ;;  %v393_v7 = vpop.f32.mrf.mxu1 }
  0xdb   :  { %v3412_v10 = vadd.f32 %v2386_v21, %v402_v22  ;;  %v394_v40 = vadd.f32 %v393_v7, %v229_v25 }
  0xdc   :  { %v768_v61 = vpop.f32.mrf.mxu0  ;;  %v2369_v19 = vpop.f32.mrf.mxu1 }
  0xdd   :  { %v3414_v49 = vadd.f32 %v768_v61, %v394_v40  ;;  %v405_v36 = vadd.f32 %v2369_v19, %v2351_v55 }
  0xde   :  { %v2387_v28 = vpop.f32.mrf.mxu0  ;;  %v396_v3 = vpop.f32.mrf.mxu1 }
  0xdf   :  { %v3416_v1 = vadd.f32 %v2387_v28, %v405_v36  ;;  %v397_v33 = vadd.f32 %v396_v3, %v232_v32 }
  0xe0   :  { %v771_v45 = vpop.f32.mrf.mxu0  ;;  %v2372_v44 = vpop.f32.mrf.mxu1 }
  0xe1   :  { %v3418_v2 = vadd.f32 %v771_v45, %v397_v33  ;;  %v418_v15 = vadd.f32 %v2372_v44, %v2354_v41 }
  0xe2   :  { %v409_v35 = vpop.f32.mrf.mxu1 }
  0xe3   :  { %v410_v52 = vadd.f32 %v409_v35, %v245_v53 }
  0xe4   :  { %v2373_v37 = vpop.f32.mrf.mxu1 }
  0xe5   :  { %v2390_v4 = vpop.f32.mrf.mxu0  ;;  %v421_v20 = vadd.f32 %v2373_v37, %v2355_v0 }
  0xe6   :  { %v3420_v63 = vadd.f32 %v2390_v4, %v418_v15  ;;  %v412_v31 = vpop.f32.mrf.mxu1 }
  0xe7   :  { %v784_v39 = vpop.f32.mrf.mxu0  ;;  %v413_v14 = vadd.f32 %v412_v31, %v248_v62 }
  0xe8   :  { %v3422_v59 = vadd.f32 %v784_v39, %v410_v52  ;;  %v2376_v48 = vpop.f32.mrf.mxu1 }
  0xe9   :  { %v2391_v30 = vpop.f32.mrf.mxu0  ;;  %v434_v56 = vadd.f32 %v2376_v48, %v2358_v29 }
  0xea   :  { %v3424_v16 = vadd.f32 %v2391_v30, %v421_v20  ;;  %v425_v5 = vpop.f32.mrf.mxu1 }
  0xeb   :  { %v787_v27 = vpop.f32.mrf.mxu0  ;;  %v426_v11 = vadd.f32 %v425_v5, %v261_v50 }
  0xec   :  { %v3426_v8 = vadd.f32 %v787_v27, %v413_v14  ;;  %v2377_v23 = vpop.f32.mrf.mxu1 }
  0xed   :  { %v437_v46 = vadd.f32 %v2377_v23, %v2359_v51 }
  0xee   :  { %v428_v24 = vpop.f32.mrf.mxu1 }
  0xef   :  { %v2394_v42 = vpop.f32.mrf.mxu0  ;;  %v429_v47 = vadd.f32 %v428_v24, %v264_v6 }
  0xf0   :  { %v3428_v34 = vadd.f32 %v2394_v42, %v434_v56  ;;  %v2380_v54 = vpop.f32.mrf.mxu1 }
  0xf1   :  { %v800_v12 = vpop.f32.mrf.mxu0  ;;  %v450_v9 = vadd.f32 %v2380_v54, %v2362_v26 }
  0xf2   :  { %v3430_v60 = vadd.f32 %v800_v12, %v426_v11  ;;  %v441_v38 = vpop.f32.mrf.mxu1 }
  0xf3   :  { %v2395_v18 = vpop.f32.mrf.mxu0  ;;  %v442_v43 = vadd.f32 %v441_v38, %v277_v57 }
  0xf4   :  { %v3432_v29 = vadd.f32 %v2395_v18, %v437_v46  ;;  %v2381_v25 = vpop.f32.mrf.mxu1 }
  0xf5   :  { %v803_v55 = vpop.f32.mrf.mxu0  ;;  %v453_v50 = vadd.f32 %v2381_v25, %v2363_v58 }
  0xf6   :  { %v3434_v32 = vadd.f32 %v803_v55, %v429_v47  ;;  %v444_v51 = vpop.f32.mrf.mxu1 }
  0xf7   :  { %v445_v41 = vadd.f32 %v444_v51, %v280_v17 }
  0xf8   :  { %v2404_v6 = vpop.f32.mrf.mxu1 }
  0xf9   :  { %v2398_v53 = vpop.f32.mrf.mxu0 }
  0xfa   :  { %v3436_v0 = vadd.f32 %v2398_v53, %v450_v9  ;;  %v948_v62 = vpop.f32.mrf.mxu1 }
  0xfb   :  { %v816_v26 = vpop.f32.mrf.mxu0 }
  0xfc   :  { %v3438_v13 = vadd.f32 %v816_v26, %v442_v43  ;;  %v3440_v22 = vpop.f32.mrf.mxu1 }
  0xfd   :  { %v2399_v57 = vpop.f32.mrf.mxu0 }
  0xfe   :  { %3759 = vst [vmem:[#allocation13_spill] sm:$0xff] %v3438_v13  ;;  %v3442_v21 = vadd.f32 %v2399_v57, %v453_v50  ;;  %v3444_v7 = vpop.f32.mrf.mxu1  ;;  %v1011_v13 = vadd.f32 %v948_v62, %v3414_v49 }
  0xff   :  { %v819_v58 = vpop.f32.mrf.mxu0 }
 0x100   :  { %3760 = vst [vmem:[#allocation2_spill] sm:$0xff] %v3442_v21  ;;  %v3446_v40 = vadd.f32 %v819_v58, %v445_v41  ;;  %v3448_v61 = vpop.f32.mrf.mxu1  ;;  %v1013_v21 = vadd.f32 %v2404_v6, %v3412_v10  ;;  %v1012_v10 = vadd.f32 %v3444_v7, %v3418_v2 }
 0x101   :  { %v2422_v17 = vpop.f32.mrf.mxu0  ;;  %v1017_v62 = vadd.f32 %v3448_v61, %v3420_v63 }
 0x102   :  { %3761 = vst [vmem:[#allocation3_spill] sm:$0xff] %v3446_v40  ;;  %v3450_v19 = vpop.f32.mrf.mxu1 }
 0x103   :  { %v1128_v36 = vpop.f32.mrf.mxu0 }
 0x104   :  { %v3452_v28 = vpop.f32.mrf.mxu1 }
 0x105   :  { %v2423_v3 = vpop.f32.mrf.mxu0  ;;  %v1018_v7 = vadd.f32 %v3452_v28, %v3424_v16 }
 0x106   :  { %v3454_v33 = vpop.f32.mrf.mxu1 }
 0x107   :  { %v3456_v45 = vpop.f32.mrf.mxu0 }
 0x108   :  { %v3458_v44 = vpop.f32.mrf.mxu1 }
 0x109   :  { %v3460_v15 = vpop.f32.mrf.mxu0  ;;  %v1021_v28 = vadd.f32 %v3458_v44, %v3428_v34 }
 0x10a   :  { %v3462_v35 = vpop.f32.mrf.mxu1 }
 0x10b   :  { %v3464_v52 = vpop.f32.mrf.mxu0 }
 0x10c   :  { %v3466_v4 = vpop.f32.mrf.mxu1 }
 0x10d   :  { %v3468_v37 = vpop.f32.mrf.mxu0 }
 0x10e   :  { %v3470_v20 = vpop.f32.mrf.mxu1  ;;  %v1198_v16 = vadd.f32 %v3468_v37, %v1018_v7 }
 0x10f   :  { %v3472_v39 = vpop.f32.mrf.mxu0 }
 0x110   :  { %v3474_v31 = vpop.f32.mrf.mxu1 }
 0x111   :  { %v3476_v14 = vpop.f32.mrf.mxu0 }
 0x112   :  { %v3478_v30 = vpop.f32.mrf.mxu1 }
 0x113   :  { %3762 = vst [vmem:[#allocation18_spill] sm:$0xff] %v3478_v30  ;;  %v3480_v48 = vpop.f32.mrf.mxu0 }
 0x114   :  { %v3482_v56 = vpop.f32.mrf.mxu1 }
 0x115   :  { %3763 = vst [vmem:[#allocation11_spill] sm:$0xff] %v3482_v56  ;;  %v3484_v27 = vpop.f32.mrf.mxu0 }
 0x116   :  { %v3486_v5 = vpop.f32.mrf.mxu1 }
 0x117   :  { %3764 = vst [vmem:[#allocation10_spill] sm:$0xff] %v3486_v5  ;;  %v3488_v11 = vpop.f32.mrf.mxu0 }
 0x118   :  { %3765 = vst [vmem:[#allocation4_spill] sm:$0xff] %v3488_v11  ;;  %v2440_v23 = vpop.f32.mrf.mxu1 }
 0x119   :  { %v3490_v46 = vpop.f32.mrf.mxu0 }
 0x11a   :  { %3766 = vst [vmem:[#allocation5_spill] sm:$0xff] %v3490_v46  ;;  %v1516_v24 = vpop.f32.mrf.mxu1 }
 0x11b   :  { %v3492_v42 = vpop.f32.mrf.mxu0 }
 0x11c   :  { %3767 = vst [vmem:[#allocation8_spill] sm:$0xff] %v3492_v42  ;;  %v2441_v47 = vpop.f32.mrf.mxu1 }
 0x11d   :  { %v3494_v54 = vpop.f32.mrf.mxu0 }
 0x11e   :  { %3768 = vst [vmem:[#allocation9_spill] sm:$0xff] %v3494_v54  ;;  %v1519_v12 = vpop.f32.mrf.mxu1 }
 0x11f   :  { %v3496_v9 = vpop.f32.mrf.mxu0 }
 0x120   :  { %3769 = vst [vmem:[#allocation16_spill] sm:$0xff] %v3496_v9  ;;  %v2444_v38 = vpop.f32.mrf.mxu1 }
 0x121   :  { %v2458_v18 = vpop.f32.mrf.mxu0 }
 0x122   :  { %v1532_v43 = vpop.f32.mrf.mxu1 }
 0x123   :  { %v1668_v25 = vpop.f32.mrf.mxu0 }
 0x124   :  { %v3498_v55 = vpop.f32.mrf.mxu1 }
 0x125   :  { %v2459_v50 = vpop.f32.mrf.mxu0  ;;  %v1586_v37 = vadd.f32 %v3498_v55, %v1198_v16 }
 0x126   :  { %v3500_v51 = vpop.f32.mrf.mxu1 }
 0x127   :  { %v1671_v41 = vpop.f32.mrf.mxu0 }
 0x128   :  { %v3502_v53 = vpop.f32.mrf.mxu1 }
 0x129   :  { %v3504_v26 = vpop.f32.mrf.mxu0 }
 0x12a   :  { %v3506_v57 = vpop.f32.mrf.mxu1 }
 0x12b   :  { %3770 = vst [vmem:[#allocation15_spill] sm:$0xff] %v3506_v57  ;;  %v3508_v58 = vpop.f32.mrf.mxu0  ;;  %v1193_v57 = vadd.f32 %v2422_v17, %v1013_v21 }
 0x12c   :  { %v3510_v54 = vpop.f32.mrf.mxu1 }
 0x12d   :  { %3771 = vst [vmem:[#allocation12_spill] sm:$0xff] %v3510_v54  ;;  %v3512_v9 = vpop.f32.mrf.mxu0  ;;  %v1581_v6 = vadd.f32 %v2440_v23, %v1193_v57 }
 0x12e   :  { %v3514_v5 = vpop.f32.mrf.mxu1 }
 0x12f   :  { %3772 = vst [vmem:[#allocation14_spill] sm:$0xff] %v3514_v5  ;;  %v3516_v40 = vpop.f32.mrf.mxu0  ;;  %v1014_v5 = vadd.f32 %v3440_v22, %v3416_v1  ;;  %v1192_v1 = vadd.f32 %v3456_v45, %v1012_v10  ;;  %v1733_v22 = vadd.f32 %v2458_v18, %v1581_v6  ;;  %v1016_v45 = vadd.f32 %v3454_v33, %v3426_v8 }
 0x130   :  { %3773 = vst [vmem:[#allocation6_spill] sm:$0xff] %v3516_v40  ;;  %v3518_v42 = vpop.f32.mrf.mxu1 }
 0x131   :  { %3774 = vst [vmem:[#allocation7_spill] sm:$0xff] %v3518_v42  ;;  %v3520_v56 = vpop.f32.mrf.mxu0  ;;  %v1194_v49 = vadd.f32 %v2423_v3, %v1014_v5  ;;  %v1197_v3 = vadd.f32 %v3460_v15, %v1017_v62  ;;  %v1580_v61 = vadd.f32 %v1519_v12, %v1192_v1 }
 0x132   :  { %3775 = vst [vmem:[#allocation17_spill] sm:$0xff] %v3520_v56  ;;  %v3523_v46 = vpop.f32.mrf.mxu1  ;;  %v1191_v56 = vadd.f32 %v1128_v36, %v1011_v13  ;;  %v1015_v13 = vadd.f32 %v3450_v19, %v3422_v59 }
 0x133   :  { %3776 = vst [vmem:[#allocation19_spill] sm:$0xff] %v3523_v46  ;;  %v3525_v30 = vpop.f32.mrf.mxu0  ;;  %v1582_v36 = vadd.f32 %v2441_v47, %v1194_v49  ;;  %v1585_v47 = vadd.f32 %v2444_v38, %v1197_v3  ;;  %v1732_v8 = vadd.f32 %v1671_v41, %v1580_v61  ;;  %v1196_v38 = vadd.f32 %v3472_v39, %v1016_v45  ;;  %v3782_v45 = vld [vmem:[#allocation13_spill] sm:$0xff] }
 0x134   :  { %3777 = vst [vmem:[#allocation20_spill] sm:$0xff] %v3525_v30  ;;  %v3528_v11 = vpop.f32.mrf.mxu1  ;;  %v1579_v21 = vadd.f32 %v1516_v24, %v1191_v56  ;;  %v1195_v59 = vadd.f32 %v3464_v52, %v1015_v13  ;;  %v1022_v41 = vadd.f32 %v3466_v4, %v3432_v29  ;;  %v1020_v29 = vadd.f32 %v3470_v20, %v3434_v32  ;;  %v3779_v20 = vld [vmem:[#allocation15_spill] sm:$0xff] }
 0x135   :  { %3778 = vst [vmem:[#allocation21_spill] sm:$0xff] %v3528_v11  ;;  %v3530_v54 = vpop.f32.mrf.mxu0  ;;  %v1734_v19 = vadd.f32 %v2459_v50, %v1582_v36  ;;  %v1019_v50 = vadd.f32 %v3462_v35, %v3430_v60  ;;  %v1737_v34 = vadd.f32 %v3504_v26, %v1585_v47  ;;  %v1584_v39 = vadd.f32 %v3500_v51, %v1196_v38 }
 0x136   :  { %v3534_v40 = vpop.f32.mrf.mxu1  ;;  %v1731_v63 = vadd.f32 %v1668_v25, %v1579_v21  ;;  %v1583_v33 = vadd.f32 %v1532_v43, %v1195_v59  ;;  %v1201_v43 = vadd.f32 %v3476_v14, %v1021_v28  ;;  %v1025_v32 = vadd.f32 %v3474_v31, %v3436_v0  ;;  %v3783_v59 = vld [vmem:[#allocation18_spill] sm:$0xff]  ;;  %v3784_v31 = vld [vmem:[#allocation12_spill] sm:$0xff] }
 0x137   :  { %v3536_v42 = vpop.f32.mrf.mxu0  ;;  %v1199_v14 = vadd.f32 %v3480_v48, %v1019_v50  ;;  %v1202_v48 = vadd.f32 %v3484_v27, %v1022_v41  ;;  %v3780_v7 = vld [vmem:[#allocation6_spill] sm:$0xff]  ;;  %v1023_v0 = vadd.f32 %v3783_v59, %v3782_v45  ;;  %v3791_v41 = vld [vmem:[#allocation8_spill] sm:$0xff] }
 0x138   :  { %v2476_v46 = vpop.f32.mrf.mxu1  ;;  %v1735_v60 = vadd.f32 %v3508_v58, %v1583_v33  ;;  %v1589_v4 = vadd.f32 %v3502_v53, %v1201_v43  ;;  %v1738_v58 = vadd.f32 %v3512_v9, %v1586_v37  ;;  %v1736_v9 = vadd.f32 %v3780_v7, %v1584_v39  ;;  %v3786_v33 = vld [vmem:[#allocation5_spill] sm:$0xff]  ;;  %v3789_v50 = vld [vmem:[#allocation14_spill] sm:$0xff]  ;;  %v3797_v7 = vld [vmem:[#allocation16_spill] sm:$0xff] }
 0x139   :  { %v3540_v30 = vpop.f32.mrf.mxu0  ;;  %v1885_v56 = vadd.f32 %v2476_v46, %v1733_v22  ;;  %v3565_v46 = vld [vmem:[%s3694_s2] ss:$0 sm:$0xff]  ;;  %v1587_v53 = vadd.f32 %v3779_v20, %v1199_v14  ;;  %v1203_v39 = vadd.f32 %v3791_v41, %v1023_v0 }
 0x13a   :  { %v1820_v17 = vpop.f32.mrf.mxu1 }
 0x13b   :  { %v3544_v11 = vpop.f32.mrf.mxu0  ;;  %v1883_v18 = vadd.f32 %v1820_v17, %v1731_v63 }
 0x13c   :  { %v2477_v2 = vpop.f32.mrf.mxu1 }
 0x13d   :  { %v3551_v23 = vpop.f32.mrf.mxu0  ;;  %v1886_v25 = vadd.f32 %v2477_v2, %v1734_v19  ;;  %v1590_v19 = vadd.f32 %v3784_v31, %v1202_v48 }
 0x13e   :  { %v1823_v5 = vpop.f32.mrf.mxu1 }
 0x13f   :  { %v3556_v24 = vpop.f32.mrf.mxu0  ;;  %v1884_v49 = vadd.f32 %v1823_v5, %v1732_v8  ;;  %v3781_v5 = vld [vmem:[#allocation4_spill] sm:$0xff]  ;;  %v1742_v14 = vadd.f32 %v3530_v54, %v1590_v19 }
 0x140   :  { %v2480_v57 = vpop.f32.mrf.mxu1  ;;  %v1200_v27 = vadd.f32 %v3781_v5, %v1020_v29 }
 0x141   :  { %v2494_v15 = vpop.f32.mrf.mxu0  ;;  %v1889_v26 = vadd.f32 %v2480_v57, %v1737_v34  ;;  %v3790_v34 = vld [vmem:[#allocation20_spill] sm:$0xff] }
 0x142   :  { %v2063_v12 = vadd.f32 %v2494_v15, %v1885_v56  ;;  %v1836_v52 = vpop.f32.mrf.mxu1  ;;  %v1588_v37 = vadd.f32 %v3789_v50, %v1200_v27 }
 0x143   :  { %v1998_v10 = vpop.f32.mrf.mxu0  ;;  %v1887_v22 = vadd.f32 %v1836_v52, %v1735_v60  ;;  %v3788_v52 = vld [vmem:[#allocation11_spill] sm:$0xff]  ;;  %v3793_v60 = vld [vmem:[#allocation10_spill] sm:$0xff] }
 0x144   :  { %v2086_v44 = vadd.f32 %v3565_v46, %v2063_v12  ;;  %v2061_v6 = vadd.f32 %v1998_v10, %v1883_v18  ;;  %v2481_v62 = vpop.f32.mrf.mxu1  ;;  %v3785_v18 = vld [vmem:[#allocation17_spill] sm:$0xff]  ;;  %v1205_v12 = vadd.f32 %v3786_v33, %v1025_v32  ;;  %v1740_v32 = vadd.f32 %v3536_v42, %v1588_v37 }
 0x145   :  { %v2495_v21 = vpop.f32.mrf.mxu0  ;;  %v1890_v61 = vadd.f32 %v2481_v62, %v1738_v58  ;;  %v1741_v57 = vadd.f32 %v3785_v18, %v1589_v4 }
 0x146   :  { %2102 = vst.msk [vmem:[%s3695_s3 + $0x10] sm:$0xff] %vm166_vm1, %v2086_v44  ;;  %v2084_v35 = vadd.f32 %v3565_v46, %v2061_v6  ;;  %v2064_v55 = vadd.f32 %v2495_v21, %v1886_v25  ;;  %v1839_v17 = vpop.f32.mrf.mxu1  ;;  %v3787_v25 = vld [vmem:[#allocation2_spill] sm:$0xff]  ;;  %v1739_v44 = vadd.f32 %v3790_v34, %v1587_v53  ;;  %v3792_v21 = vld [vmem:[#allocation3_spill] sm:$0xff] }
 0x147   :  { %v2001_v51 = vpop.f32.mrf.mxu0  ;;  %v1888_v15 = vadd.f32 %v1839_v17, %v1736_v9  ;;  %v1026_v38 = vadd.f32 %v3788_v52, %v3787_v25 }
 0x148   :  { %2100 = vst.msk [vmem:[%s3695_s3] sm:$0xff] %vm166_vm1, %v2084_v35  ;;  %v2087_v1 = vadd.f32 %v3565_v46, %v2064_v55  ;;  %v2062_v13 = vadd.f32 %v2001_v51, %v1884_v49  ;;  %v2484_v36 = vpop.f32.mrf.mxu1  ;;  %v1024_v35 = vadd.f32 %v3793_v60, %v3792_v21  ;;  %v3794_v55 = vld [vmem:[#allocation7_spill] sm:$0xff] }
 0x149   :  { %v2498_v2 = vpop.f32.mrf.mxu0  ;;  %v1893_v62 = vadd.f32 %v2484_v36, %v1741_v57 }
 0x14a   :  { %2103 = vst.msk [vmem:[%s3695_s3 + $0x18] sm:$0xff] %vm166_vm1, %v2087_v1  ;;  %v2085_v3 = vadd.f32 %v3565_v46, %v2062_v13  ;;  %v2067_v63 = vadd.f32 %v2498_v2, %v1889_v26  ;;  %v1852_v56 = vpop.f32.mrf.mxu1  ;;  %v1593_v26 = vadd.f32 %v3794_v55, %v1205_v12  ;;  %v3795_v1 = vld [vmem:[#allocation9_spill] sm:$0xff]  ;;  %v1204_v9 = vadd.f32 %v3797_v7, %v1024_v35 }
 0x14b   :  { %v2014_v47 = vpop.f32.mrf.mxu0  ;;  %v1891_v51 = vadd.f32 %v1852_v56, %v1739_v44  ;;  %v1206_v13 = vadd.f32 %v3795_v1, %v1026_v38 }
 0x14c   :  { %2101 = vst.msk [vmem:[%s3695_s3 + $0x8] sm:$0xff] %vm166_vm1, %v2085_v3  ;;  %v2090_v16 = vadd.f32 %v3565_v46, %v2067_v63  ;;  %v2065_v28 = vadd.f32 %v2014_v47, %v1887_v22  ;;  %v2485_v8 = vpop.f32.mrf.mxu1  ;;  %v3796_v22 = vld [vmem:[#allocation19_spill] sm:$0xff]  ;;  %v3798_v3 = vld [vmem:[#allocation21_spill] sm:$0xff]  ;;  %v1745_v56 = vadd.f32 %v3540_v30, %v1593_v26  ;;  %v1592_v45 = vadd.f32 %v3534_v40, %v1204_v9 }
 0x14d   :  { %v2499_v10 = vpop.f32.mrf.mxu0  ;;  %v1591_v36 = vadd.f32 %v3796_v22, %v1203_v39  ;;  %v1894_v53 = vadd.f32 %v2485_v8, %v1742_v14  ;;  %v1594_v63 = vadd.f32 %v3798_v3, %v1206_v13 }
 0x14e   :  { %2106 = vst.msk [vmem:[%s3695_s3 + $0x30] sm:$0xff] %vm166_vm1, %v2090_v16  ;;  %v2088_v6 = vadd.f32 %v3565_v46, %v2065_v28  ;;  %v2068_v49 = vadd.f32 %v2499_v10, %v1890_v61  ;;  %v1855_v43 = vpop.f32.mrf.mxu1  ;;  %v1744_v8 = vadd.f32 %v3556_v24, %v1592_v45 }
 0x14f   :  { %v2017_v17 = vpop.f32.mrf.mxu0  ;;  %v1892_v27 = vadd.f32 %v1855_v43, %v1740_v32  ;;  %v1743_v31 = vadd.f32 %v3544_v11, %v1591_v36  ;;  %v1746_v57 = vadd.f32 %v3551_v23, %v1594_v63 }
 0x150   :  { %2104 = vst.msk [vmem:[%s3695_s3 + $0x20] sm:$0xff] %vm166_vm1, %v2088_v6  ;;  %v2091_v29 = vadd.f32 %v3565_v46, %v2068_v49  ;;  %v2066_v4 = vadd.f32 %v2017_v17, %v1888_v15  ;;  %v2488_v58 = vpop.f32.mrf.mxu1 }
 0x151   :  { %v2502_v48 = vpop.f32.mrf.mxu0  ;;  %v1897_v47 = vadd.f32 %v2488_v58, %v1745_v56 }
 0x152   :  { %2107 = vst.msk [vmem:[%s3695_s3 + $0x38] sm:$0xff] %vm166_vm1, %v2091_v29  ;;  %v2089_v54 = vadd.f32 %v3565_v46, %v2066_v4  ;;  %v2071_v20 = vadd.f32 %v2502_v48, %v1893_v62  ;;  %v1868_v2 = vpop.f32.mrf.mxu1 }
 0x153   :  { %v2030_v61 = vpop.f32.mrf.mxu0  ;;  %v1895_v16 = vadd.f32 %v1868_v2, %v1743_v31 }
 0x154   :  { %2105 = vst.msk [vmem:[%s3695_s3 + $0x28] sm:$0xff] %vm166_vm1, %v2089_v54  ;;  %v2094_v42 = vadd.f32 %v3565_v46, %v2071_v20  ;;  %v2069_v5 = vadd.f32 %v2030_v61, %v1891_v51  ;;  %v2489_v0 = vpop.f32.mrf.mxu1 }
 0x155   :  { %v2503_v59 = vpop.f32.mrf.mxu0  ;;  %v1898_v12 = vadd.f32 %v2489_v0, %v1746_v57 }
 0x156   :  { %2110 = vst.msk [vmem:[%s3695_s3 + $0x50] sm:$0xff] %vm166_vm1, %v2094_v42  ;;  %v2092_v30 = vadd.f32 %v3565_v46, %v2069_v5  ;;  %v2072_v19 = vadd.f32 %v2503_v59, %v1894_v53  ;;  %v1871_v15 = vpop.f32.mrf.mxu1 }
 0x157   :  { %v2033_v18 = vpop.f32.mrf.mxu0  ;;  %v1896_v50 = vadd.f32 %v1871_v15, %v1744_v8 }
 0x158   :  { %2108 = vst.msk [vmem:[%s3695_s3 + $0x40] sm:$0xff] %vm166_vm1, %v2092_v30  ;;  %v2095_v40 = vadd.f32 %v3565_v46, %v2072_v19  ;;  %v2070_v11 = vadd.f32 %v2033_v18, %v1892_v27 }
 0x159   :  { %v2506_v28 = vpop.f32.mrf.mxu0 }
 0x15a   :  { %2111 = vst.msk [vmem:[%s3695_s3 + $0x58] sm:$0xff] %vm166_vm1, %v2095_v40  ;;  %v2093_v23 = vadd.f32 %v3565_v46, %v2070_v11  ;;  %v2075_v33 = vadd.f32 %v2506_v28, %v1897_v47 }
 0x15b   :  { %v2046_v25 = vpop.f32.mrf.mxu0 }
 0x15c   :  { %2109 = vst.msk [vmem:[%s3695_s3 + $0x48] sm:$0xff] %vm166_vm1, %v2093_v23  ;;  %v2098_v52 = vadd.f32 %v3565_v46, %v2075_v33  ;;  %v2073_v38 = vadd.f32 %v2046_v25, %v1895_v16 }
 0x15d   :  { %v2507_v24 = vpop.f32.mrf.mxu0 }
 0x15e   :  { %2114 = vst.msk [vmem:[%s3695_s3 + $0x70] sm:$0xff] %vm166_vm1, %v2098_v52  ;;  %v2096_v37 = vadd.f32 %v3565_v46, %v2073_v38  ;;  %v2076_v10 = vadd.f32 %v2507_v24, %v1898_v12 }
 0x15f   :  { %v2049_v34 = vpop.f32.mrf.mxu0 }
 0x160   :  { %2112 = vst.msk [vmem:[%s3695_s3 + $0x60] sm:$0xff] %vm166_vm1, %v2096_v37  ;;  %v2099_v44 = vadd.f32 %v3565_v46, %v2076_v10  ;;  %v2074_v6 = vadd.f32 %v2049_v34, %v1896_v50 }
 0x162   :  { %2115 = vst.msk [vmem:[%s3695_s3 + $0x78] sm:$0xff] %vm166_vm1, %v2099_v44  ;;  %v2097_v49 = vadd.f32 %v3565_v46, %v2074_v6 }
 0x164   :  { %2113 = vst.msk [vmem:[%s3695_s3 + $0x68] sm:$0xff] %vm166_vm1, %v2097_v49 }

</bundles_post_ra>
